<compile_context>
chip_gen: v5e
topology: v5e:2x2
jax: 0.10.0
libtpu: 0.0.40
codegen_flags: <defaults>
</compile_context>

<pallas_src>
import jax
import jax.numpy as jnp
from jax.experimental import pallas as pl
from jax.experimental.pallas import tpu as pltpu


# ----------------------------------------------------------------------------
# helpers
# ----------------------------------------------------------------------------
def _round_up(x, m):
    return ((x + m - 1) // m) * m


def _pad2(a, rows, cols, val=0.0):
    return jnp.pad(a, ((0, rows - a.shape[0]), (0, cols - a.shape[1])),
                   constant_values=val)


# ----------------------------------------------------------------------------
# fused Pallas kernel: grid axis = layer index (sequential / "arbitrary")
# ----------------------------------------------------------------------------
def _make_fused_kernel(inv_n):
    def kernel(adj_ref, x0_ref, mask_ref, member_ref,
               w1_ref, w2_ref, vec_ref,
               xs_ref, xpool_ref, x_scr):
        layer = pl.program_id(0)

        # Load the (padded) node features into the resident activation once.
        @pl.when(layer == 0)
        def _():
            x_scr[...] = x0_ref[...]

        x = x_scr[...]                                     # f32 [Np, P]

        # Per-layer packed vectors: row 0 = (1+eps), 1 = b1, 2 = b2,
        # 3 = gamma, 4 = beta (rows 5..7 are padding).  One small DMA/layer.
        v = vec_ref[0]                                     # f32 [8, P]
        epsb, b1, b2, gamma, beta = (v[0:1], v[1:2], v[2:3], v[3:4], v[4:5])

        # pooled = adj @ x + (1 + eps) * x   (bf16 MXU inputs, f32 accumulate)
        pooled = jnp.dot(adj_ref[...], x.astype(jnp.bfloat16),
                         preferred_element_type=jnp.float32)
        pooled = pooled + epsb * x                         # fused multiply-add

        # MLP(2): Linear -> ReLU -> Linear, then the outer F.relu
        h = jnp.dot(pooled.astype(jnp.bfloat16), w1_ref[0],
                    preferred_element_type=jnp.float32) + b1
        h = jnp.maximum(h, 0.0)
        h = jnp.dot(h.astype(jnp.bfloat16), w2_ref[0],
                    preferred_element_type=jnp.float32) + b2
        h = jnp.maximum(h, 0.0)

        # BatchNorm1d (training-mode, biased variance) over the REAL node rows
        # only: padded rows are excluded via the row mask.
        mask = mask_ref[...]                               # [Np, 1]
        mean = jnp.sum(h * mask, axis=0, keepdims=True) * inv_n
        cent = h - mean
        var = jnp.sum(jnp.square(cent) * mask, axis=0, keepdims=True) * inv_n
        out = gamma * (cent * jax.lax.rsqrt(var + 1e-5)) + beta
        out = out * mask                                   # keep padded rows zero

        x_scr[...] = out                                   # carry to next layer
        xs_ref[...] = out                                  # lane-dense column block
        xpool_ref[...] = jnp.dot(member_ref[...], out,     # fused global_add_pool
                                 preferred_element_type=jnp.float32)

    return kernel


# ----------------------------------------------------------------------------
# wrapper: pads to TPU-friendly shapes, stacks per-layer params, one pallas_call
# ----------------------------------------------------------------------------
def encoder2_forward(params, x, adj, member):
    """Returns (xpool [G, L*dim], xs_cat [N, L*dim]) like Encoder2.forward."""
    eps = params["eps"]
    layers = params["layers"]
    L = len(layers)
    N, F = x.shape
    G = member.shape[0]
    dim = layers[0][2].shape[1]                   # w2: (dim, dim)

    P = _round_up(max(F, dim), 128)               # lane-dense feature width
    Np = _round_up(N, 8)                          # sublane-aligned node rows
    Gp = _round_up(G, 8)

    # ---- pad & stack parameters: [L, P, P] weights, one packed [L, 8, P] vecs ----
    w1s = jnp.stack([_pad2(w1, P, P) for (w1, _, _, _, _, _) in layers]
                    ).astype(jnp.bfloat16)                      # [L, P, P]
    w2s = jnp.stack([_pad2(w2, P, P) for (_, _, w2, _, _, _) in layers]
                    ).astype(jnp.bfloat16)                      # [L, P, P]
    vec_rows = []
    for i, (_, b1, _, b2, g, bt) in enumerate(layers):
        vec_rows.append(jnp.concatenate([
            jnp.full((1, P), 1.0 + eps[i], jnp.float32),        # row 0: 1 + eps
            _pad2(b1, 1, P),                                    # row 1: b1
            _pad2(b2, 1, P),                                    # row 2: b2
            _pad2(g, 1, P, 1.0),                                # row 3: gamma
            _pad2(bt, 1, P),                                    # row 4: beta
            jnp.zeros((3, P), jnp.float32),                     # rows 5..7: pad
        ], axis=0))
    vecs = jnp.stack(vec_rows)                                  # [L, 8, P]

    # ---- pad inputs ----
    x0 = _pad2(x, Np, P)                                        # f32
    adj_p = _pad2(adj, Np, Np).astype(jnp.bfloat16)             # exact small counts
    member_p = _pad2(member, Gp, Np)                            # f32 one-hot
    row_mask = (jnp.arange(Np) < N).astype(jnp.float32).reshape(Np, 1)

    kernel = _make_fused_kernel(1.0 / N)

    grid_spec = pltpu.PrefetchScalarGridSpec(
        num_scalar_prefetch=0,
        grid=(L,),
        in_specs=[
            pl.BlockSpec((Np, Np), lambda l: (0, 0)),       # adj (fetched once)
            pl.BlockSpec((Np, P), lambda l: (0, 0)),        # x0
            pl.BlockSpec((Np, 1), lambda l: (0, 0)),        # node-row mask
            pl.BlockSpec((Gp, Np), lambda l: (0, 0)),       # graph membership
            pl.BlockSpec((1, P, P), lambda l: (l, 0, 0)),   # W1[l]
            pl.BlockSpec((1, P, P), lambda l: (l, 0, 0)),   # W2[l]
            pl.BlockSpec((1, 8, P), lambda l: (l, 0, 0)),   # packed per-layer vecs
        ],
        out_specs=[
            pl.BlockSpec((Np, P), lambda l: (0, l)),        # xs_cat  [Np, L*P]
            pl.BlockSpec((Gp, P), lambda l: (0, l)),        # xpool   [Gp, L*P]
        ],
        scratch_shapes=[pltpu.VMEM((Np, P), jnp.float32)],  # resident activation
    )

    flops = L * (2 * Np * Np * P + 4 * Np * P * P + 2 * Gp * Np * P)
    bytes_accessed = (adj_p.size * 2 + x0.size * 4 + member_p.size * 4
                      + (w1s.size + w2s.size) * 2 + vecs.size * 4
                      + row_mask.size * 4
                      + (Np + Gp) * L * P * 4)
    cost = pl.CostEstimate(flops=flops, transcendentals=L * P,
                           bytes_accessed=bytes_accessed)

    xs_pad, xpool_pad = pl.pallas_call(
        kernel,
        out_shape=[jax.ShapeDtypeStruct((Np, L * P), jnp.float32),
                   jax.ShapeDtypeStruct((Gp, L * P), jnp.float32)],
        grid_spec=grid_spec,
        compiler_params=pltpu.CompilerParams(
            dimension_semantics=("arbitrary",)),   # layers are sequential
        cost_estimate=cost,
    )(adj_p, x0, row_mask, member_p, w1s, w2s, vecs)

    # strip row padding and any interleaved padded feature columns
    xs_cat = xs_pad[:N].reshape(N, L, P)[:, :, :dim].reshape(N, L * dim)
    xpool = xpool_pad[:G].reshape(G, L, P)[:, :, :dim].reshape(G, L * dim)
    return xpool, xs_cat


# ----------------------------------------------------------------------------
# pure-JAX reference (same bf16-matmul / f32-accumulate policy as the kernel)
# ----------------------------------------------------------------------------
def encoder2_reference(params, x, adj, member):
    adj_bf = adj.astype(jnp.bfloat16)
    xs = []
    for i, (w1, b1, w2, b2, gamma, beta) in enumerate(params["layers"]):
        eps_l = params["eps"][i]
        pooled = jnp.dot(adj_bf, x.astype(jnp.bfloat16),
                         preferred_element_type=jnp.float32) + (1.0 + eps_l) * x
        h = jnp.dot(pooled.astype(jnp.bfloat16), w1.astype(jnp.bfloat16),
                    preferred_element_type=jnp.float32) + b1
        h = jnp.maximum(h, 0.0)
        h = jnp.dot(h.astype(jnp.bfloat16), w2.astype(jnp.bfloat16),
                    preferred_element_type=jnp.float32) + b2
        h = jnp.maximum(h, 0.0)
        mean = jnp.mean(h, axis=0, keepdims=True)
        var = jnp.mean(jnp.square(h - mean), axis=0, keepdims=True)
        x = gamma * (h - mean) * jax.lax.rsqrt(var + 1e-5) + beta
        xs.append(x)
    xs_cat = jnp.concatenate(xs, axis=1)
    return member @ xs_cat, xs_cat


# ----------------------------------------------------------------------------
# deterministic parameter construction (Encoder2.__init__ shapes)
# ----------------------------------------------------------------------------
def make_params(key, num_features, dim, num_gc_layers):
    # eps is Parameter(torch.zeros(L)) at init; use small random values here so
    # the (1 + eps) path is actually exercised by the numerical check.
    key, ke = jax.random.split(key)
    eps = 0.05 * jax.random.normal(ke, (num_gc_layers,), jnp.float32)
    layers = []
    for i in range(num_gc_layers):
        fin = num_features if i == 0 else dim
        key, k1, k2, k3, k4 = jax.random.split(key, 5)
        w1 = 0.1 * jax.random.normal(k1, (fin, dim), jnp.float32)
        b1 = 0.1 * jax.random.normal(k2, (1, dim), jnp.float32)
        w2 = 0.1 * jax.random.normal(k3, (dim, dim), jnp.float32)
        b2 = 0.1 * jax.random.normal(k4, (1, dim), jnp.float32)
        gamma = jnp.ones((1, dim), jnp.float32)      # BatchNorm1d default weight
        beta = jnp.zeros((1, dim), jnp.float32)      # BatchNorm1d default bias
        layers.append((w1, b1, w2, b2, gamma, beta))
    return {"eps": eps, "layers": layers}


# ----------------------------------------------------------------------------
if __name__ == "__main__":
    key = jax.random.PRNGKey(0)
    # Sized so the matmuls are MXU/lane friendly: dim = 128 (one full lane
    # width), 256 nodes (8 graphs of 32 nodes batched along the node axis).
    N, NUM_FEATURES, DIM, NUM_GC_LAYERS, G = 256, 32, 128, 3, 8
    NUM_EDGES = 1024

    key, kx, ks, kd, kp = jax.random.split(key, 5)
    x = jax.random.normal(kx, (N, NUM_FEATURES), jnp.float32)        # data.x
    src = jax.random.randint(ks, (NUM_EDGES,), 0, N)                 # edge_index[0]
    dst = jax.random.randint(kd, (NUM_EDGES,), 0, N)                 # edge_index[1]
    batch = jnp.repeat(jnp.arange(G, dtype=jnp.int32), N // G)       # data.batch

    # densify sparse_coo_tensor(edge_index, ones, (N, N))
    adj = jnp.zeros((N, N), jnp.float32).at[src, dst].add(1.0)
    # one-hot graph membership: global_add_pool(x, batch) == member @ x
    member = (batch[None, :] == jnp.arange(G)[:, None]).astype(jnp.float32)

    params = make_params(kp, NUM_FEATURES, DIM, NUM_GC_LAYERS)

    xpool, xs_cat = encoder2_forward(params, x, adj, member)
    xpool = jax.block_until_ready(xpool)
    xs_cat = jax.block_until_ready(xs_cat)

    # correctness check against the pure-JAX reference (same dtype policy);
    # loose-ish max tolerance covers rare 1-ulp bf16 rounding divergence between
    # the two implementations, the mean-error check keeps the test meaningful.
    xpool_ref, xs_ref = encoder2_reference(params, x, adj, member)
    assert xpool.shape == (G, NUM_GC_LAYERS * DIM)
    assert xs_cat.shape == (N, NUM_GC_LAYERS * DIM)
    assert jnp.allclose(xs_cat, xs_ref, atol=5e-2, rtol=5e-2)
    assert jnp.allclose(xpool, xpool_ref, atol=5e-2, rtol=5e-2)
    assert float(jnp.mean(jnp.abs(xs_cat - xs_ref))) < 5e-3
    assert float(jnp.mean(jnp.abs(xpool - xpool_ref))) < 5e-2

    print("KERNEL_OK")
</pallas_src>

<mosaic_0001>
module attributes {stable_mosaic.version = 11 : i64} {
  func.func @kernel(%arg0: i32, %arg1: memref<256x256xbf16, #tpu.memory_space<vmem>>, %arg2: memref<256x128xf32, #tpu.memory_space<vmem>>, %arg3: memref<256x1xf32, #tpu.memory_space<vmem>>, %arg4: memref<8x256xf32, #tpu.memory_space<vmem>>, %arg5: memref<1x128x128xbf16, #tpu.memory_space<vmem>>, %arg6: memref<1x128x128xbf16, #tpu.memory_space<vmem>>, %arg7: memref<1x8x128xf32, #tpu.memory_space<vmem>>, %arg8: memref<256x128xf32, #tpu.memory_space<vmem>>, %arg9: memref<8x128xf32, #tpu.memory_space<vmem>>, %arg10: memref<256x128xf32, #tpu.memory_space<vmem>>) attributes {dimension_semantics = [#tpu.dimension_semantics<arbitrary>], iteration_bounds = array<i64: 3>, scalar_prefetch = 0 : i64, scratch_operands = 1 : i64, tpu.core_type = #tpu.core_type<tc>, window_params = [{pipeline_mode = #tpu.pipeline_mode<synchronous>, transform_indices = @transform_0, window_bounds = array<i64: 256, 256>}, {pipeline_mode = #tpu.pipeline_mode<synchronous>, transform_indices = @transform_1, window_bounds = array<i64: 256, 128>}, {pipeline_mode = #tpu.pipeline_mode<synchronous>, transform_indices = @transform_2, window_bounds = array<i64: 256, 1>}, {pipeline_mode = #tpu.pipeline_mode<synchronous>, transform_indices = @transform_3, window_bounds = array<i64: 8, 256>}, {transform_indices = @transform_4, window_bounds = array<i64: 1, 128, 128>}, {transform_indices = @transform_5, window_bounds = array<i64: 1, 128, 128>}, {transform_indices = @transform_6, window_bounds = array<i64: 1, 8, 128>}, {transform_indices = @transform_7, window_bounds = array<i64: 256, 128>}, {transform_indices = @transform_8, window_bounds = array<i64: 8, 128>}]} {
    %c0_i32 = arith.constant 0 : i32
    %0 = arith.cmpi eq, %arg0, %c0_i32 : i32
    %1 = arith.extui %0 : i1 to i32
    %c0_i32_0 = arith.constant 0 : i32
    %2 = arith.cmpi ne, %1, %c0_i32_0 : i32
    scf.if %2 {
      %c0_33 = arith.constant 0 : index
      %c0_34 = arith.constant 0 : index
      %65 = vector.load %arg2[%c0_33, %c0_34] : memref<256x128xf32, #tpu.memory_space<vmem>>, vector<256x128xf32>
      %c0_35 = arith.constant 0 : index
      %c0_36 = arith.constant 0 : index
      %66 = vector.load %arg10[%c0_35, %c0_36] : memref<256x128xf32, #tpu.memory_space<vmem>>, vector<256x128xf32>
      tpu.vector_store %arg10[%c0_35, %c0_36], %65 {strides = array<i32>} : memref<256x128xf32, #tpu.memory_space<vmem>>, vector<256x128xf32>,
    } else {
    }
    %c0 = arith.constant 0 : index
    %c0_1 = arith.constant 0 : index
    %3 = vector.load %arg10[%c0, %c0_1] : memref<256x128xf32, #tpu.memory_space<vmem>>, vector<256x128xf32>
    %c0_2 = arith.constant 0 : index
    %c0_3 = arith.constant 0 : index
    %c0_4 = arith.constant 0 : index
    %4 = vector.load %arg7[%c0_2, %c0_3, %c0_4] : memref<1x8x128xf32, #tpu.memory_space<vmem>>, vector<1x8x128xf32>
    %5 = vector.shape_cast %4 : vector<1x8x128xf32> to vector<8x128xf32>
    %6 = vector.extract_strided_slice %5 {offsets = [0, 0], sizes = [1, 128], strides = [1, 1]} : vector<8x128xf32> to vector<1x128xf32>
    %7 = vector.extract_strided_slice %5 {offsets = [1, 0], sizes = [1, 128], strides = [1, 1]} : vector<8x128xf32> to vector<1x128xf32>
    %8 = vector.extract_strided_slice %5 {offsets = [2, 0], sizes = [1, 128], strides = [1, 1]} : vector<8x128xf32> to vector<1x128xf32>
    %9 = vector.extract_strided_slice %5 {offsets = [3, 0], sizes = [1, 128], strides = [1, 1]} : vector<8x128xf32> to vector<1x128xf32>
    %10 = vector.extract_strided_slice %5 {offsets = [4, 0], sizes = [1, 128], strides = [1, 1]} : vector<8x128xf32> to vector<1x128xf32>
    %c0_5 = arith.constant 0 : index
    %c0_6 = arith.constant 0 : index
    %11 = vector.load %arg1[%c0_5, %c0_6] : memref<256x256xbf16, #tpu.memory_space<vmem>>, vector<256x256xbf16>
    %12 = arith.truncf %3 : vector<256x128xf32> to vector<256x128xbf16>
    %cst = arith.constant dense<0.000000e+00> : vector<256x128xf32>
    %13 = tpu.matmul %11, %12, %cst {dimension_numbers = #tpu.dot_dimension_numbers<[1], [0], [0], [1], [0, 0, 1, 1], [], []>} : vector<256x256xbf16>, vector<256x128xbf16>, vector<256x128xf32> -> vector<256x128xf32>
    %14 = vector.broadcast %6 : vector<1x128xf32> to vector<256x128xf32>
    %15 = arith.mulf %14, %3 : vector<256x128xf32>
    %16 = arith.addf %13, %15 : vector<256x128xf32>
    %17 = arith.truncf %16 : vector<256x128xf32> to vector<256x128xbf16>
    %c0_7 = arith.constant 0 : index
    %c0_8 = arith.constant 0 : index
    %c0_9 = arith.constant 0 : index
    %18 = vector.load %arg5[%c0_7, %c0_8, %c0_9] : memref<1x128x128xbf16, #tpu.memory_space<vmem>>, vector<1x128x128xbf16>
    %19 = vector.shape_cast %18 : vector<1x128x128xbf16> to vector<128x128xbf16>
    %cst_10 = arith.constant dense<0.000000e+00> : vector<256x128xf32>
    %20 = tpu.matmul %17, %19, %cst_10 {dimension_numbers = #tpu.dot_dimension_numbers<[1], [0], [0], [1], [0, 0, 1, 1], [], []>} : vector<256x128xbf16>, vector<128x128xbf16>, vector<256x128xf32> -> vector<256x128xf32>
    %21 = vector.broadcast %7 : vector<1x128xf32> to vector<256x128xf32>
    %22 = arith.addf %20, %21 : vector<256x128xf32>
    %cst_11 = arith.constant 0.000000e+00 : f32
    %23 = vector.broadcast %cst_11 : f32 to vector<256x128xf32>
    %24 = arith.maximumf %22, %23 : vector<256x128xf32>
    %25 = arith.truncf %24 : vector<256x128xf32> to vector<256x128xbf16>
    %c0_12 = arith.constant 0 : index
    %c0_13 = arith.constant 0 : index
    %c0_14 = arith.constant 0 : index
    %26 = vector.load %arg6[%c0_12, %c0_13, %c0_14] : memref<1x128x128xbf16, #tpu.memory_space<vmem>>, vector<1x128x128xbf16>
    %27 = vector.shape_cast %26 : vector<1x128x128xbf16> to vector<128x128xbf16>
    %cst_15 = arith.constant dense<0.000000e+00> : vector<256x128xf32>
    %28 = tpu.matmul %25, %27, %cst_15 {dimension_numbers = #tpu.dot_dimension_numbers<[1], [0], [0], [1], [0, 0, 1, 1], [], []>} : vector<256x128xbf16>, vector<128x128xbf16>, vector<256x128xf32> -> vector<256x128xf32>
    %29 = vector.broadcast %8 : vector<1x128xf32> to vector<256x128xf32>
    %30 = arith.addf %28, %29 : vector<256x128xf32>
    %cst_16 = arith.constant 0.000000e+00 : f32
    %31 = vector.broadcast %cst_16 : f32 to vector<256x128xf32>
    %32 = arith.maximumf %30, %31 : vector<256x128xf32>
    %c0_17 = arith.constant 0 : index
    %c0_18 = arith.constant 0 : index
    %33 = vector.load %arg3[%c0_17, %c0_18] : memref<256x1xf32, #tpu.memory_space<vmem>>, vector<256x1xf32>
    %34 = vector.broadcast %33 : vector<256x1xf32> to vector<256x128xf32>
    %35 = arith.mulf %32, %34 : vector<256x128xf32>
    %cst_19 = arith.constant dense<0.000000e+00> : vector<128xf32>
    %36 = vector.multi_reduction <add>, %35, %cst_19 [0] : vector<256x128xf32> to vector<128xf32>
    %37 = vector.shape_cast %36 : vector<128xf32> to vector<1x128xf32>
    %cst_20 = arith.constant 3.906250e-03 : f32
    %38 = vector.broadcast %cst_20 : f32 to vector<1x128xf32>
    %39 = arith.mulf %37, %38 : vector<1x128xf32>
    %40 = vector.broadcast %39 : vector<1x128xf32> to vector<256x128xf32>
    %41 = arith.subf %32, %40 : vector<256x128xf32>
    %42 = arith.mulf %41, %41 : vector<256x128xf32>
    %43 = vector.broadcast %33 : vector<256x1xf32> to vector<256x128xf32>
    %44 = arith.mulf %42, %43 : vector<256x128xf32>
    %cst_21 = arith.constant dense<0.000000e+00> : vector<128xf32>
    %45 = vector.multi_reduction <add>, %44, %cst_21 [0] : vector<256x128xf32> to vector<128xf32>
    %46 = vector.shape_cast %45 : vector<128xf32> to vector<1x128xf32>
    %cst_22 = arith.constant 3.906250e-03 : f32
    %47 = vector.broadcast %cst_22 : f32 to vector<1x128xf32>
    %48 = arith.mulf %46, %47 : vector<1x128xf32>
    %cst_23 = arith.constant 9.99999974E-6 : f32
    %49 = vector.broadcast %cst_23 : f32 to vector<1x128xf32>
    %50 = arith.addf %48, %49 : vector<1x128xf32>
    %51 = math.rsqrt %50 : vector<1x128xf32>
    %52 = vector.broadcast %51 : vector<1x128xf32> to vector<256x128xf32>
    %53 = arith.mulf %41, %52 : vector<256x128xf32>
    %54 = vector.broadcast %9 : vector<1x128xf32> to vector<256x128xf32>
    %55 = arith.mulf %54, %53 : vector<256x128xf32>
    %56 = vector.broadcast %10 : vector<1x128xf32> to vector<256x128xf32>
    %57 = arith.addf %55, %56 : vector<256x128xf32>
    %58 = vector.broadcast %33 : vector<256x1xf32> to vector<256x128xf32>
    %59 = arith.mulf %57, %58 : vector<256x128xf32>
    %c0_24 = arith.constant 0 : index
    %c0_25 = arith.constant 0 : index
    %60 = vector.load %arg10[%c0_24, %c0_25] : memref<256x128xf32, #tpu.memory_space<vmem>>, vector<256x128xf32>
    tpu.vector_store %arg10[%c0_24, %c0_25], %59 {strides = array<i32>} : memref<256x128xf32, #tpu.memory_space<vmem>>, vector<256x128xf32>,
    %c0_26 = arith.constant 0 : index
    %c0_27 = arith.constant 0 : index
    %61 = vector.load %arg8[%c0_26, %c0_27] : memref<256x128xf32, #tpu.memory_space<vmem>>, vector<256x128xf32>
    tpu.vector_store %arg8[%c0_26, %c0_27], %59 {strides = array<i32>} : memref<256x128xf32, #tpu.memory_space<vmem>>, vector<256x128xf32>,
    %c0_28 = arith.constant 0 : index
    %c0_29 = arith.constant 0 : index
    %62 = vector.load %arg4[%c0_28, %c0_29] : memref<8x256xf32, #tpu.memory_space<vmem>>, vector<8x256xf32>
    %cst_30 = arith.constant dense<0.000000e+00> : vector<8x128xf32>
    %63 = tpu.matmul %62, %59, %cst_30 {dimension_numbers = #tpu.dot_dimension_numbers<[1], [0], [0], [1], [0, 0, 1, 1], [], []>} : vector<8x256xf32>, vector<256x128xf32>, vector<8x128xf32> -> vector<8x128xf32>
    %c0_31 = arith.constant 0 : index
    %c0_32 = arith.constant 0 : index
    %64 = vector.load %arg9[%c0_31, %c0_32] : memref<8x128xf32, #tpu.memory_space<vmem>>, vector<8x128xf32>
    tpu.vector_store %arg9[%c0_31, %c0_32], %63 {strides = array<i32>} : memref<8x128xf32, #tpu.memory_space<vmem>>, vector<8x128xf32>,
    return
  }
  func.func @transform_0(%arg0: i32) -> (i32, i32) {
    %c0_i32 = arith.constant 0 : i32
    %c0_i32_0 = arith.constant 0 : i32
    %c0_i32_1 = arith.constant 0 : i32
    return %c0_i32, %c0_i32_0 : i32, i32
  }
  func.func @transform_1(%arg0: i32) -> (i32, i32) {
    %c0_i32 = arith.constant 0 : i32
    %c0_i32_0 = arith.constant 0 : i32
    %c0_i32_1 = arith.constant 0 : i32
    return %c0_i32, %c0_i32_0 : i32, i32
  }
  func.func @transform_2(%arg0: i32) -> (i32, i32) {
    %c0_i32 = arith.constant 0 : i32
    %c0_i32_0 = arith.constant 0 : i32
    %c0_i32_1 = arith.constant 0 : i32
    return %c0_i32, %c0_i32_0 : i32, i32
  }
  func.func @transform_3(%arg0: i32) -> (i32, i32) {
    %c0_i32 = arith.constant 0 : i32
    %c0_i32_0 = arith.constant 0 : i32
    %c0_i32_1 = arith.constant 0 : i32
    return %c0_i32, %c0_i32_0 : i32, i32
  }
  func.func @transform_4(%arg0: i32) -> (i32, i32, i32) {
    %c0_i32 = arith.constant 0 : i32
    %c0_i32_0 = arith.constant 0 : i32
    %c0_i32_1 = arith.constant 0 : i32
    return %arg0, %c0_i32, %c0_i32_0 : i32, i32, i32
  }
  func.func @transform_5(%arg0: i32) -> (i32, i32, i32) {
    %c0_i32 = arith.constant 0 : i32
    %c0_i32_0 = arith.constant 0 : i32
    %c0_i32_1 = arith.constant 0 : i32
    return %arg0, %c0_i32, %c0_i32_0 : i32, i32, i32
  }
  func.func @transform_6(%arg0: i32) -> (i32, i32, i32) {
    %c0_i32 = arith.constant 0 : i32
    %c0_i32_0 = arith.constant 0 : i32
    %c0_i32_1 = arith.constant 0 : i32
    return %arg0, %c0_i32, %c0_i32_0 : i32, i32, i32
  }
  func.func @transform_7(%arg0: i32) -> (i32, i32) {
    %c0_i32 = arith.constant 0 : i32
    %c0_i32_0 = arith.constant 0 : i32
    return %c0_i32, %arg0 : i32, i32
  }
  func.func @transform_8(%arg0: i32) -> (i32, i32) {
    %c0_i32 = arith.constant 0 : i32
    %c0_i32_0 = arith.constant 0 : i32
    return %c0_i32, %arg0 : i32, i32
  }
}

</mosaic_0001>

<bundles_post_ra>
// kernel: tpu_custom_call.1
= control target key start
LH: loop header
LB: loop body
LE: loop exit
PB: predicated region body
PF: predicated region fallthrough
CT: control target
= control target key end

     0   :  { %s4583_s0 = inlined_call_operand.vmem [shape: bf16[256,256], index: 0, kind: input, shape index: {}]   ;;  %s4584_s1 = inlined_call_operand.hbm [shape: f32[256,128], index: 1, kind: input, shape index: {}]   ;;  %s4585_s2 = inlined_call_operand.vmem [shape: f32[256,1], index: 2, kind: input, shape index: {}]   ;;  %s4586_s3 = inlined_call_operand.hbm [shape: f32[8,256], index: 3, kind: input, shape index: {}]   ;;  %s4587_s4 = inlined_call_operand.hbm [shape: bf16[3,128,128], index: 4, kind: input, shape index: {}]   ;;  %s4588_s5 = inlined_call_operand.hbm [shape: bf16[3,128,128], index: 5, kind: input, shape index: {}]   ;;  %s4589_s6 = inlined_call_operand.hbm [shape: f32[3,8,128], index: 6, kind: input, shape index: {}]   ;;  %s4590_s7 = inlined_call_operand.hbm [shape: f32[256,384], index: 7, kind: output, shape index: {0}]   ;;  %s4591_s8 = inlined_call_operand.hbm [shape: f32[8,384], index: 8, kind: output, shape index: {1}]  }
   0x1   :  { %4677 = sst [smem:[#allocation51_spill]] %s4584_s1 }
   0x2   :  { %4678 = sst [smem:[#allocation52_spill]] %s4587_s4 }
   0x3   :  { %4679 = sst [smem:[#allocation53_spill]] %s4590_s7 }
   0x4   :  { %4680 = sst [smem:[#allocation54_spill]] %s4591_s8 }
   0x5   :  { %14 = vsyncpa [#allocation4], 0 }
   0x6   :  { %15 = vsyncpa [#allocation7], 0 }
   0x7   :  { %16 = vsyncpa [#allocation5], 0 }
   0x8   :  { %18 = vsyncpa [#allocation5 + $0x1], 0 }
   0x9   :  { %19 = vsyncpa [#allocation13], 0 }
   0xa   :  { %21 = vsyncpa [#allocation13 + $0x1], 0  ;;  %s2887_s27 = smov 0   ;;  %s2889_s28 = smov 0  }
   0xb   :  { %s2891_s29 = smov 0   ;;  %s2893_s30 = smov 0  }
   0xc LB: > { %4681 = sst [smem:[#allocation19_spill]] %s2818_s27  ;;  %s2908_s9 = sadd.s32 4294967295, %s2830_s30   ;;  %s2830_s30 = sphi %s2893_s30, %s4803_s30   ;;  %s2826_s29 = sphi %s2891_s29, %s4807_s29   ;;  %s2822_s28 = sphi %s2889_s28, %s4806_s28   ;;  %s2818_s27 = sphi %s2887_s27, %s4805_s27  }
   0xd   : > { %s2208_s10 = sadd.s32 4294967294, %s2830_s30   ;;  %p131_p0 = scmp.ne.s32.totalorder %s2822_s28, %s2818_s27 }
   0xe   : > { %p4596_p1 = scmp.eq.s32.totalorder %s2908_s9, 0  ;;  %p207_p2 = scmp.eq.s32.totalorder %s2908_s9, 2 }
   0xf   : > { %p213_p3 = scmp.eq.s32.totalorder %s2208_s10, 2  ;;  %p2209_p5 = scmp.ge.s32.totalorder %s2830_s30, 1 }
  0x10   : > { %p2917_p4 = por %p4596_p1, %p131_p0  ;;  %p246_p7 = scmp.lt.s32.totalorder %s2830_s30, 4 }
  0x11   : > { %p2922_p6 = por %p213_p3, %p131_p0  ;;  %s4685_s1 = sld [smem:[#allocation51_spill]] }
  0x12   : > { %p2931_p9 = pnand %p2209_p5, %p246_p7  ;;  %s2832_s17 = smov [#allocation3]  }
  0x13   : > { %s4683_s12 = scalar_select %p2922_p6, 1, 0 }
  0x14   : > { %p2496_p10 = pneg %p2931_p9  ;;  %s262_s18 = sshll.u32 %s2832_s17, 4  ;;  %s263_s18 = int_to_ptr.vmem [resolvable:$true] %s262_s18 }
  0x15   : > { %4684 = sst [smem:[#allocation20_spill]] %s4683_s12  ;;  %s2944_s20 = sadd.s32 1, %s2830_s30  }
  0x16   : > { %p2939_p11 = pnand %p2496_p10, %p4596_p1  ;;  %4688 = sst [smem:[#allocation21_spill]] %s2944_s20 }
  0x17   : > { %s260_s15 = sshll.u32 %s4685_s1, 4  ;;  %s2833_s21 = smov 128   ;;  %s261_s15 = int_to_ptr.hbm [resolvable:$true] %s260_s15 }
  0x18   : > { %s2834_s22 = smov 8   ;;  %s115_s23 = ssub.s32 %s2830_s30, %s2944_s20 }
  0x19   : > { %2499 = dma.hbm_to_vmem [thread:$0]  (!%p2939_p11), %s261_s15, 4096, %s263_s18, [#allocation4], %s2833_s21, %s2833_s21, %s2834_s22  }
  0x1a   : > { %s118_s24 = sadd.s32 1, %s2826_s29  ;;  %p116_p12 = scmp.eq.s32.totalorder %s115_s23, 0 }
  0x1b   : > { %p125_p13 = scmp.ne.s32.totalorder %s2826_s29, %s2822_s28  ;;  %p126_p0 = scmp.eq.s32.totalorder %s2830_s30, 0 }
  0x1c   : > { %p2522_p3 = scmp.lt.s32.totalorder %s2830_s30, 3  ;;  %s291_s10 = sand.u32 1, %s2830_s30  }
  0x1d   : > { %s2956_s25 = scalar_select %p116_p12, %s2826_s29, %s118_s24  }
  0x1e   : > { %p127_p5 = por %p126_p0, %p125_p13  ;;  %p2960_p7 = por %p207_p2, %p125_p13 }
  0x1f   : > { %4689 = sst [smem:[#allocation22_spill]] %s2956_s25  ;;  %s4592_s13 = sand.u32 1, %s2826_s29  }
  0x20   : > { %s4690_s26 = scalar_select %p2960_p7, 1, 0 }
  0x21   : > { %s2968_s14 = sshll.u32 %s4592_s13, 6  ;;  %s4595_s15 = sshll.u32 %s2830_s30, 6 }
  0x22   : > { %4691 = sst [smem:[#allocation23_spill]] %s4690_s26  ;;  %s295_s22 = scalar_lea.vmem [#allocation8], %s2968_s14 }
  0x23   : > { %s4692_s4 = sld [smem:[#allocation52_spill]]  ;;  %s303_s23 = sshll.u32 %s295_s22, 4  ;;  %s304_s23 = int_to_ptr.vmem [resolvable:$true] %s303_s23 }
  0x24   : > { %p2979_p2 = pnand %p2522_p3, %p127_p5  ;;  %s2983_s13 = scalar_lea.sflag [#allocation4], %s291_s10 }
  0x26   : > { %p2608_p12 = pneg %p2979_p2 }
  0x29   : > { %s300_s21 = scalar_lea.hbm %s4692_s4, %s4595_s15 }
  0x2a   : > { %s301_s24 = sshll.u32 %s300_s21, 4  ;;  %s2611_s21 = scalar_lea.hbm %s4692_s4, 192  ;;  %s302_s24 = int_to_ptr.hbm [resolvable:$true] %s301_s24 }
  0x2b   : > { %s2604_s25 = sshra.s32 %s302_s24, 4  ;;  %s2605_s25 = int_to_ptr.hbm [resolvable:$true] %s2604_s25 }
  0x2c   : > { %s2606_s20 = scalar_lea.hbm %s2605_s25, 64  ;;  %p2612_p3 = scmp.lt.s32.totalorder %s2605_s25, %s4692_s4 }
  0x2d   : > { %p2607_p10 = scmp.ne.s32.totalorder %s2605_s25, %s2606_s20  ;;  %p2613_p5 = scmp.lt.s32.totalorder %s2611_s21, %s2606_s20 }
  0x2f   : > { %p2609_p13 = pnand %p2608_p12, %p2607_p10  ;;  %p2614_p8 = por %p2613_p5, %p2612_p3 }
  0x31   : > { %p2610_p0 = pneg %p2609_p13 }
  0x33   : > { %p2615_p1 = pnand %p2614_p8, %p2610_p0 }
  0x35   : > { %2618 = shalt.err (!%p2615_p1)
}
  0x36   : > { %s2835_s10 = smov 64   ;;  %s2836_s12 = smov 4  }
  0x37   : > { %2506 = dma.hbm_to_vmem [thread:$0]  (!%p2979_p2), %s302_s24, 1024, %s304_s23, %s2983_s13, %s2835_s10, %s2835_s10, %s2836_s12  }
  0x38   : > { %s4694_s27 = sshll.u32 %s2830_s30, 6  ;;  %s317_s15 = scalar_lea.vmem [#allocation9], %s2968_s14 }
  0x39   : > { %s322_s8 = scalar_lea.hbm %s4588_s5, %s4694_s27  ;;  %s325_s25 = sshll.u32 %s317_s15, 4  ;;  %s326_s25 = int_to_ptr.vmem [resolvable:$true] %s325_s25 }
  0x3a   : > { %s323_s20 = sshll.u32 %s322_s8, 4  ;;  %s278_s4 = sshll.u32 %s4586_s3, 4  ;;  %s324_s20 = int_to_ptr.hbm [resolvable:$true] %s323_s20  ;;  %s279_s4 = int_to_ptr.hbm [resolvable:$true] %s278_s4 }
  0x3b   : > { %s2634_s26 = sshra.s32 %s324_s20, 4  ;;  %s2641_s27 = scalar_lea.hbm %s4588_s5, 192  ;;  %s2635_s26 = int_to_ptr.hbm [resolvable:$true] %s2634_s26 }
  0x3c   : > { %s2636_s7 = scalar_lea.hbm %s2635_s26, 64  ;;  %p2642_p13 = scmp.lt.s32.totalorder %s2635_s26, %s4588_s5 }
  0x3d   : > { %p2637_p1 = scmp.ne.s32.totalorder %s2635_s26, %s2636_s7  ;;  %p2643_p0 = scmp.lt.s32.totalorder %s2641_s27, %s2636_s7 }
  0x3f   : > { %p2639_p8 = pnand %p2637_p1, %p2608_p12  ;;  %p2644_p3 = por %p2643_p0, %p2642_p13 }
  0x41   : > { %p2640_p10 = pneg %p2639_p8 }
  0x43   : > { %p2645_p5 = pnand %p2644_p3, %p2640_p10 }
  0x45   : > { %2648 = shalt.err (!%p2645_p5)
}
  0x46   : > { %2509 = dma.hbm_to_vmem [thread:$0]  (!%p2979_p2), %s324_s20, 1024, %s326_s25, %s2983_s13, %s2835_s10, %s2835_s10, %s2836_s12  }
  0x47   : > { %s2837_s17 = smov [#allocation6]   ;;  %s4695_s15 = sand.u32 1, %s2826_s29  }
  0x48   : > { %s280_s18 = sshll.u32 %s2837_s17, 4  ;;  %s2219_s21 = sshll.u32 %s4695_s15, 3  ;;  %s281_s18 = int_to_ptr.vmem [resolvable:$true] %s280_s18 }
  0x49   : > { %2502 = dma.hbm_to_vmem [thread:$0]  (!%p2939_p11), %s279_s4, 256, %s281_s18, [#allocation7]  }
  0x4a   : > { %s2220_s7 = sshll.u32 %s2830_s30, 3  ;;  %s339_s26 = scalar_lea.vmem [#allocation10], %s2219_s21 }
  0x4b   : > { %s347_s22 = sshll.u32 %s339_s26, 4  ;;  %s343_s27 = scalar_lea.hbm %s4589_s6, %s2220_s7  ;;  %s348_s22 = int_to_ptr.vmem [resolvable:$true] %s347_s22 }
  0x4c   : > { %s345_s14 = sshll.u32 %s343_s27, 4  ;;  %s2701_s25 = scalar_lea.hbm %s4589_s6, 24  ;;  %s346_s14 = int_to_ptr.hbm [resolvable:$true] %s345_s14 }
  0x4d   : > { %s2694_s12 = sshra.s32 %s346_s14, 4  ;;  %s2695_s12 = int_to_ptr.hbm [resolvable:$true] %s2694_s12 }
  0x4e   : > { %s2696_s10 = scalar_lea.hbm %s2695_s12, 8  ;;  %p2702_p11 = scmp.lt.s32.totalorder %s2695_s12, %s4589_s6 }
  0x4f   : > { %p2697_p1 = scmp.ne.s32.totalorder %s2695_s12, %s2696_s10  ;;  %p2703_p13 = scmp.lt.s32.totalorder %s2701_s25, %s2696_s10 }
  0x51   : > { %p2699_p8 = pnand %p2697_p1, %p2608_p12  ;;  %p2704_p0 = por %p2703_p13, %p2702_p11 }
  0x53   : > { %p2700_p10 = pneg %p2699_p8 }
  0x55   : > { %p2705_p3 = pnand %p2704_p0, %p2700_p10 }
  0x57   : > { %2708 = shalt.err (!%p2705_p3)
}
  0x58   : > { %2512 = dma.hbm_to_vmem [thread:$0]  (!%p2979_p2), %s346_s14, 128, %s348_s22, %s2983_s13  }
  0x59   : > { %356 = sbr.rel (%p2931_p9) target bundleno = 1160 (0x488), region = 48 }
  0x5e   : > { %p4696_p12 = scmp.eq.s32.totalorder %s2908_s9, 0 }
  0x60   : > { %2797 = dma.done.wait (%p4696_p12), [#allocation4], 4096   ;;  %p4697_p5 = pmov %p4696_p12 }
  0x62   : > { %2799 = vsyncadd (%p4697_p5), [#allocation4], 4294963200  ;;  %p4698_p1 = pmov %p4697_p5 }
  0x64   : > { %2801 = dma.done.wait (%p4698_p1), [#allocation7], 256   ;;  %p4699_p8 = pmov %p4698_p1 }
  0x65   : > { %s368_s1 = sand.u32 1, %s2908_s9   ;;  %s3052_s13 = sand.u32 1, %s2822_s28  }
  0x66   : > { %2803 = vsyncadd (%p4699_p8), [#allocation7], 4294967040  ;;  %s2224_s16 = sshll.u32 %s3052_s13, 6  ;;  %s369_s17 = scalar_lea.sflag [#allocation4], %s368_s1 }
  0x67   : > { %s3055_s18 = scalar_lea.vmem [#allocation8], %s2224_s16 }
  0x68   : > { %2805 = dma.done.wait (%p2917_p4), %s369_s17, 2176  }
  0x69   : > { %2807 = vsyncadd (%p2917_p4), %s369_s17, 4294965120  ;;  %s2226_s15 = sshll.u32 %s3052_s13, 3  ;;  %s2227_s21 = sshll.u32 %s3052_s13, 8 }
  0x6a   : > { %s3063_s7 = scalar_lea.vmem [#allocation9], %s2224_s16  ;;  %s3065_s26 = scalar_lea.vmem [#allocation10], %s2226_s15 }
  0x6b   : > { %s3067_s22 = scalar_lea.vmem [#allocation11], %s2227_s21  ;;  %s3069_s23 = scalar_lea.vmem [#allocation12], %s2226_s15 }
  0x6c   : > { %p4700_p9 = scmp.ne.s32.totalorder %s2908_s9, 0 }
  0x6e   : > { %444 = sbr.rel (%p4700_p9) target bundleno = 148 (0x94), region = 72 }
  0x73   : > { %v445_v0 = vld [vmem:[#allocation3] sm:$0xff]  ;;  %v446_v1 = vld [vmem:[#allocation3 + $0x8] sm:$0xff]  ;;  %v447_v2 = vld [vmem:[#allocation3 + $0x10] sm:$0xff] }
  0x74   : > { %477 = vst [vmem:[#allocation2 + $0xb0] sm:$0xff] %v445_v0  ;;  %v448_v3 = vld [vmem:[#allocation3 + $0x18] sm:$0xff]  ;;  %v449_v4 = vld [vmem:[#allocation3 + $0x20] sm:$0xff]  ;;  %v450_v5 = vld [vmem:[#allocation3 + $0x28] sm:$0xff] }
  0x75   : > { %478 = vst [vmem:[#allocation2] sm:$0xff] %v446_v1  ;;  %v451_v6 = vld [vmem:[#allocation3 + $0x30] sm:$0xff]  ;;  %v452_v7 = vld [vmem:[#allocation3 + $0x38] sm:$0xff]  ;;  %v453_v8 = vld [vmem:[#allocation3 + $0x40] sm:$0xff] }
  0x76   : > { %479 = vst [vmem:[#allocation2 + $0xd8] sm:$0xff] %v447_v2  ;;  %v454_v9 = vld [vmem:[#allocation3 + $0x48] sm:$0xff]  ;;  %v455_v10 = vld [vmem:[#allocation3 + $0x50] sm:$0xff]  ;;  %v456_v11 = vld [vmem:[#allocation3 + $0x58] sm:$0xff] }
  0x77   : > { %480 = vst [vmem:[#allocation2 + $0x18] sm:$0xff] %v448_v3  ;;  %v457_v12 = vld [vmem:[#allocation3 + $0x60] sm:$0xff]  ;;  %v458_v13 = vld [vmem:[#allocation3 + $0x68] sm:$0xff]  ;;  %v459_v14 = vld [vmem:[#allocation3 + $0x70] sm:$0xff] }
  0x78   : > { %481 = vst [vmem:[#allocation2 + $0x50] sm:$0xff] %v449_v4  ;;  %v460_v15 = vld [vmem:[#allocation3 + $0x78] sm:$0xff]  ;;  %v461_v16 = vld [vmem:[#allocation3 + $0x80] sm:$0xff]  ;;  %v462_v17 = vld [vmem:[#allocation3 + $0x88] sm:$0xff] }
  0x79   : > { %482 = vst [vmem:[#allocation2 + $0x68] sm:$0xff] %v450_v5  ;;  %v463_v18 = vld [vmem:[#allocation3 + $0x90] sm:$0xff]  ;;  %v464_v19 = vld [vmem:[#allocation3 + $0x98] sm:$0xff]  ;;  %v465_v20 = vld [vmem:[#allocation3 + $0xa0] sm:$0xff] }
  0x7a   : > { %483 = vst [vmem:[#allocation2 + $0x30] sm:$0xff] %v451_v6  ;;  %v466_v21 = vld [vmem:[#allocation3 + $0xa8] sm:$0xff]  ;;  %v467_v22 = vld [vmem:[#allocation3 + $0xb0] sm:$0xff]  ;;  %v468_v23 = vld [vmem:[#allocation3 + $0xb8] sm:$0xff] }
  0x7b   : > { %484 = vst [vmem:[#allocation2 + $0x48] sm:$0xff] %v452_v7  ;;  %v469_v24 = vld [vmem:[#allocation3 + $0xc0] sm:$0xff]  ;;  %v470_v25 = vld [vmem:[#allocation3 + $0xc8] sm:$0xff]  ;;  %v471_v26 = vld [vmem:[#allocation3 + $0xd0] sm:$0xff] }
  0x7c   : > { %485 = vst [vmem:[#allocation2 + $0x80] sm:$0xff] %v453_v8  ;;  %v472_v27 = vld [vmem:[#allocation3 + $0xd8] sm:$0xff]  ;;  %v473_v28 = vld [vmem:[#allocation3 + $0xe0] sm:$0xff]  ;;  %v474_v29 = vld [vmem:[#allocation3 + $0xe8] sm:$0xff] }
  0x7d   : > { %486 = vst [vmem:[#allocation2 + $0x88] sm:$0xff] %v454_v9  ;;  %v475_v30 = vld [vmem:[#allocation3 + $0xf0] sm:$0xff]  ;;  %v476_v31 = vld [vmem:[#allocation3 + $0xf8] sm:$0xff] }
  0x7e   : > { %487 = vst [vmem:[#allocation2 + $0xe8] sm:$0xff] %v455_v10 }
  0x7f   : > { %488 = vst [vmem:[#allocation2 + $0xb8] sm:$0xff] %v456_v11 }
  0x80   : > { %489 = vst [vmem:[#allocation2 + $0x60] sm:$0xff] %v457_v12 }
  0x81   : > { %490 = vst [vmem:[#allocation2 + $0xf0] sm:$0xff] %v458_v13 }
  0x82   : > { %491 = vst [vmem:[#allocation2 + $0x8] sm:$0xff] %v459_v14 }
  0x83   : > { %492 = vst [vmem:[#allocation2 + $0x78] sm:$0xff] %v460_v15 }
  0x84   : > { %493 = vst [vmem:[#allocation2 + $0x38] sm:$0xff] %v461_v16 }
  0x85   : > { %494 = vst [vmem:[#allocation2 + $0x58] sm:$0xff] %v462_v17 }
  0x86   : > { %495 = vst [vmem:[#allocation2 + $0x40] sm:$0xff] %v463_v18 }
  0x87   : > { %496 = vst [vmem:[#allocation2 + $0xc8] sm:$0xff] %v464_v19 }
  0x88   : > { %497 = vst [vmem:[#allocation2 + $0xe0] sm:$0xff] %v465_v20 }
  0x89   : > { %498 = vst [vmem:[#allocation2 + $0x90] sm:$0xff] %v466_v21 }
  0x8a   : > { %499 = vst [vmem:[#allocation2 + $0x70] sm:$0xff] %v467_v22 }
  0x8b   : > { %500 = vst [vmem:[#allocation2 + $0xc0] sm:$0xff] %v468_v23 }
  0x8c   : > { %501 = vst [vmem:[#allocation2 + $0xa8] sm:$0xff] %v469_v24 }
  0x8d   : > { %502 = vst [vmem:[#allocation2 + $0xd0] sm:$0xff] %v470_v25 }
  0x8e   : > { %503 = vst [vmem:[#allocation2 + $0x10] sm:$0xff] %v471_v26 }
  0x8f   : > { %504 = vst [vmem:[#allocation2 + $0x28] sm:$0xff] %v472_v27 }
  0x90   : > { %505 = vst [vmem:[#allocation2 + $0xa0] sm:$0xff] %v473_v28 }
  0x91   : > { %506 = vst [vmem:[#allocation2 + $0xf8] sm:$0xff] %v474_v29 }
  0x92   : > { %507 = vst [vmem:[#allocation2 + $0x20] sm:$0xff] %v475_v30 }
  0x93   : > { %508 = vst [vmem:[#allocation2 + $0x98] sm:$0xff] %v476_v31 }
  0x94 PF: > { %v3073_v32 = vld [vmem:[#allocation2 + $0x8] sm:$0xff]  ;;  %v3075_v33 = vld [vmem:[#allocation2 + $0x78] sm:$0xff]  ;;  %v3083_v37 = vld [vmem:[#allocation2 + $0x60] sm:$0xff]  ;;  %s4798_s19 = sld [smem:[#allocation53_spill]]  ;;  %s2026_s25 = sshll.u32 %s3067_s22, 4  ;;  %s2027_s25 = int_to_ptr.vmem [resolvable:$true] %s2026_s25 }
  0x95   : > { %v581_v35 = vpack.c.bf16 %v3075_v33, %v3073_v32  ;;  %v3085_v38 = vld [vmem:[#allocation2 + $0xf0] sm:$0xff]  ;;  %v3097_v44 = vld [vmem:[#allocation2 + $0xe8] sm:$0xff]  ;;  %v3099_v45 = vld [vmem:[#allocation2 + $0xb8] sm:$0xff]  ;;  %s2010_s1 = scalar_lea.sflag [#allocation5], %s3052_s13 }
  0x96   : > { %v580_v42 = vpack.c.bf16 %v3085_v38, %v3083_v37  ;;  %v3101_v46 = vld [vmem:[#allocation2 + $0x10] sm:$0xff]  ;;  %v3103_v47 = vld [vmem:[#allocation2 + $0x28] sm:$0xff]  ;;  %v579_v48 = vpack.c.bf16 %v3099_v45, %v3097_v44  ;;  %v3109_v50 = vld [vmem:[#allocation2 + $0x80] sm:$0xff] }
  0x97   : > { %v3089_v40 = vld [vmem:[#allocation2 + $0xa0] sm:$0xff]  ;;  %783 = vmatpush.bf16.msra.mxu0 %v581_v35  ;;  %v587_v49 = vpack.c.bf16 %v3103_v47, %v3101_v46  ;;  %v3111_v51 = vld [vmem:[#allocation2 + $0x88] sm:$0xff]  ;;  %v3115_v53 = vld [vmem:[#allocation2 + $0xd0] sm:$0xff] }
  0x98   : > { %v3091_v41 = vld [vmem:[#allocation2 + $0xf8] sm:$0xff]  ;;  %v3113_v52 = vld [vmem:[#allocation2 + $0xa8] sm:$0xff]  ;;  %v578_v54 = vpack.c.bf16 %v3111_v51, %v3109_v50  ;;  %v3121_v56 = vld [vmem:[#allocation2 + $0x30] sm:$0xff] }
  0x99   : > { %v3077_v34 = vld [vmem:[#allocation2 + $0x20] sm:$0xff]  ;;  %v588_v43 = vpack.c.bf16 %v3091_v41, %v3089_v40  ;;  %v586_v55 = vpack.c.bf16 %v3115_v53, %v3113_v52  ;;  %v3123_v57 = vld [vmem:[#allocation2 + $0x48] sm:$0xff]  ;;  %v3125_v58 = vld [vmem:[#allocation2 + $0x70] sm:$0xff] }
  0x9a   : > { %v3081_v36 = vld [vmem:[#allocation2 + $0x98] sm:$0xff]  ;;  %v3127_v59 = vld [vmem:[#allocation2 + $0xc0] sm:$0xff]  ;;  %v577_v60 = vpack.c.bf16 %v3123_v57, %v3121_v56  ;;  %v3133_v62 = vld [vmem:[#allocation2 + $0x50] sm:$0xff]  ;;  %s2744_s21 = scalar_lea.hbm %s4798_s19, 768 }
  0x9b   : > { %v589_v39 = vpack.c.bf16 %v3081_v36, %v3077_v34  ;;  %784 = vmatpush.bf16.msra.mxu0 %v580_v42  ;;  %v585_v61 = vpack.c.bf16 %v3127_v59, %v3125_v58  ;;  %v3135_v63 = vld [vmem:[#allocation2 + $0x68] sm:$0xff]  ;;  %v3137_v0 = vld [vmem:[#allocation2 + $0xe0] sm:$0xff]  ;;  %v3139_v1 = vld [vmem:[#allocation2 + $0x90] sm:$0xff] }
  0x9c   : > { %v576_v2 = vpack.c.bf16 %v3135_v63, %v3133_v62  ;;  %v584_v3 = vpack.c.bf16 %v3139_v1, %v3137_v0  ;;  %v3145_v4 = vld [vmem:[#allocation2 + $0xd8] sm:$0xff]  ;;  %v3149_v6 = vld [vmem:[#allocation2 + $0x40] sm:$0xff]  ;;  %v3151_v7 = vld [vmem:[#allocation2 + $0xc8] sm:$0xff] }
  0x9d   : > { %872 = vmatpush.bf16.msra.mxu1 %v589_v39  ;;  %v3147_v5 = vld [vmem:[#allocation2 + $0x18] sm:$0xff]  ;;  %v583_v9 = vpack.c.bf16 %v3151_v7, %v3149_v6  ;;  %v3157_v10 = vld [vmem:[#allocation2 + $0xb0] sm:$0xff]  ;;  %v3159_v11 = vld [vmem:[#allocation2] sm:$0xff] }
  0x9e   : > { %v575_v8 = vpack.c.bf16 %v3147_v5, %v3145_v4  ;;  %v3161_v12 = vld [vmem:[#allocation2 + $0x38] sm:$0xff]  ;;  %v574_v14 = vpack.c.bf16 %v3159_v11, %v3157_v10  ;;  %v2232_v15 = vld [vmem:[%s4583_s0] sm:$0xf]  ;;  %v2431_v16 = vld [vmem:[%s4583_s0 + $0x4] sm:$0xf0] }
  0x9f   : > { %785 = vmatpush.bf16.msra.mxu0 %v579_v48  ;;  %v3163_v13 = vld [vmem:[#allocation2 + $0x58] sm:$0xff]  ;;  %v2430_v18 = vld [vmem:[%s4583_s0 + $0x4] sm:$0xf]  ;;  %v2234_v19 = vld [vmem:[%s4583_s0 + $0x8] sm:$0xf0]  ;;  %v2233_v20 = vor.u32 %v2431_v16, %v2232_v15 }
  0xa0   : > { %v582_v17 = vpack.c.bf16 %v3163_v13, %v3161_v12  ;;  %v2237_v21 = vor.u32 %v2430_v18, %v2234_v19  ;;  %v2240_v22 = vld [vmem:[%s4583_s0 + $0x10] sm:$0xf]  ;;  %v2433_v23 = vld [vmem:[%s4583_s0 + $0x14] sm:$0xf0]  ;;  %v2432_v24 = vld [vmem:[%s4583_s0 + $0x14] sm:$0xf] }
  0xa1   : > { %873 = vmatpush.bf16.msra.mxu1 %v588_v43  ;;  %v2242_v25 = vld [vmem:[%s4583_s0 + $0x18] sm:$0xf0]  ;;  %v2241_v26 = vor.u32 %v2433_v23, %v2240_v22  ;;  %v2248_v28 = vld [vmem:[%s4583_s0 + $0x20] sm:$0xf]  ;;  %v2435_v29 = vld [vmem:[%s4583_s0 + $0x24] sm:$0xf0] }
  0xa2   : > { %v2245_v27 = vor.u32 %v2432_v24, %v2242_v25  ;;  %v2434_v30 = vld [vmem:[%s4583_s0 + $0x24] sm:$0xf]  ;;  %v2250_v31 = vld [vmem:[%s4583_s0 + $0x28] sm:$0xf0]  ;;  %v2249_v35 = vor.u32 %v2435_v29, %v2248_v28  ;;  %v2256_v42 = vld [vmem:[%s4583_s0 + $0x30] sm:$0xf] }
  0xa3   : > { %786 = vmatpush.bf16.msra.mxu0 %v578_v54  ;;  %v2253_v39 = vor.u32 %v2434_v30, %v2250_v31  ;;  %v2437_v43 = vld [vmem:[%s4583_s0 + $0x34] sm:$0xf0]  ;;  %v2436_v48 = vld [vmem:[%s4583_s0 + $0x34] sm:$0xf]  ;;  %v2272_v15 = vld [vmem:[%s4583_s0 + $0x50] sm:$0xf] }
  0xa4   : > { %v2257_v54 = vor.u32 %v2437_v43, %v2256_v42  ;;  %v2441_v16 = vld [vmem:[%s4583_s0 + $0x54] sm:$0xf0]  ;;  %v2274_v18 = vld [vmem:[%s4583_s0 + $0x58] sm:$0xf0]  ;;  %v2466_v23 = vld [vmem:[%s3055_s18 + $0x20] sm:$0xff] }
  0xa5   : > { %874 = vmatpush.bf16.msra.mxu1 %v587_v49  ;;  %v2258_v49 = vld [vmem:[%s4583_s0 + $0x38] sm:$0xf0]  ;;  %v2273_v19 = vor.u32 %v2441_v16, %v2272_v15  ;;  %v2280_v24 = vld [vmem:[%s4583_s0 + $0x60] sm:$0xf]  ;;  %v2443_v25 = vld [vmem:[%s4583_s0 + $0x64] sm:$0xf0] }
  0xa6   : > { %v2467_v22 = vld [vmem:[%s3055_s18 + $0x28] sm:$0xff]  ;;  %v2281_v28 = vor.u32 %v2443_v25, %v2280_v24  ;;  %v2465_v29 = vld [vmem:[%s3055_s18 + $0x18] sm:$0xff]  ;;  %v2464_v31 = vld [vmem:[%s3055_s18 + $0x10] sm:$0xff] }
  0xa7   : > { %787 = vmatpush.bf16.msra.mxu0 %v577_v60  ;;  %v2264_v60 = vld [vmem:[%s4583_s0 + $0x40] sm:$0xf]  ;;  %v2288_v42 = vld [vmem:[%s4583_s0 + $0x70] sm:$0xf]  ;;  %v2445_v43 = vld [vmem:[%s4583_s0 + $0x74] sm:$0xf0] }
  0xa9   : > { %875 = vmatpush.bf16.msra.mxu1 %v586_v55  ;;  %v2261_v55 = vor.u32 %v2436_v48, %v2258_v49  ;;  %v2444_v48 = vld [vmem:[%s4583_s0 + $0x74] sm:$0xf]  ;;  %v2290_v49 = vld [vmem:[%s4583_s0 + $0x78] sm:$0xf0] }
  0xab   : > { %788 = vmatpush.bf16.msra.mxu0 %v576_v2  ;;  %v2438_v2 = vld [vmem:[%s4583_s0 + $0x44] sm:$0xf] }
  0xad   : > { %876 = vmatpush.bf16.msra.mxu1 %v585_v61  ;;  %v2439_v61 = vld [vmem:[%s4583_s0 + $0x44] sm:$0xf0] }
  0xaf   : > { %789 = vmatpush.bf16.msra.mxu0 %v575_v8  ;;  %v2265_v8 = vor.u32 %v2439_v61, %v2264_v60  ;;  %v3274_v60 = vld [vmem:[%s3065_s26] sm:$0xff]  ;;  %v2296_v61 = vld [vmem:[%s4583_s0 + $0x80] sm:$0xf] }
  0xb1   : > { %877 = vmatpush.bf16.msra.mxu1 %v584_v3  ;;  %v2266_v3 = vld [vmem:[%s4583_s0 + $0x48] sm:$0xf0] }
  0xb3   : > { %790 = vmatpush.bf16.msra.mxu0 %v574_v14  ;;  %v2469_v14 = vld [vmem:[%s3055_s18 + $0x38] sm:$0xff] }
  0xb4   : > { %1042 = vmatpush.bf16.msra.mxu2 %v2469_v14 }
  0xb5   : > { %878 = vmatpush.bf16.msra.mxu1 %v583_v9  ;;  %v2269_v9 = vor.u32 %v2438_v2, %v2266_v3  ;;  %v2447_v2 = vld [vmem:[%s4583_s0 + $0x84] sm:$0xf0]  ;;  %v2446_v3 = vld [vmem:[%s4583_s0 + $0x84] sm:$0xf] }
  0xb6   : > { %791 = vmatmul.bf16.vlgmr.msra.gmra.mxu0 %v2233_v20  ;;  %v2297_v14 = vor.u32 %v2447_v2, %v2296_v61  ;;  %v2312_v2 = vld [vmem:[%s4583_s0 + $0xa0] sm:$0xf] }
  0xb9   : > { %879 = vmatpush.bf16.msra.mxu1 %v582_v17  ;;  %v2440_v17 = vld [vmem:[%s4583_s0 + $0x54] sm:$0xf] }
  0xba   : > { %v2277_v20 = vor.u32 %v2440_v17, %v2274_v18 }
  0xbc   : > { %880 = vmatmul.bf16.vlgmr.msra.gmra.mxu1 %v2237_v21  ;;  %v2468_v21 = vld [vmem:[%s3055_s18 + $0x30] sm:$0xff] }
  0xbd   : > { %1043 = vmatpush.bf16.msra.mxu2 %v2468_v21 }
  0xc1   : > { %1044 = vmatpush.bf16.msra.mxu2 %v2467_v22 }
  0xc5   : > { %1045 = vmatpush.bf16.msra.mxu2 %v2466_v23 }
  0xc6   : > { %796 = vmatmul.bf16.gmra.mxu0 %v2241_v26  ;;  %v2442_v26 = vld [vmem:[%s4583_s0 + $0x64] sm:$0xf] }
  0xc9   : > { %1046 = vmatpush.bf16.msra.mxu2 %v2465_v29 }
  0xcc   : > { %885 = vmatmul.bf16.gmra.mxu1 %v2245_v27  ;;  %v2282_v27 = vld [vmem:[%s4583_s0 + $0x68] sm:$0xf0] }
  0xcd   : > { %v2285_v30 = vor.u32 %v2442_v26, %v2282_v27  ;;  %1047 = vmatpush.bf16.msra.mxu2 %v2464_v31  ;;  %v2304_v26 = vld [vmem:[%s4583_s0 + $0x90] sm:$0xf]  ;;  %v2449_v27 = vld [vmem:[%s4583_s0 + $0x94] sm:$0xf0] }
  0xce   : > { %v2305_v29 = vor.u32 %v2449_v27, %v2304_v26  ;;  %v2320_v26 = vld [vmem:[%s4583_s0 + $0xb0] sm:$0xf]  ;;  %v2453_v27 = vld [vmem:[%s4583_s0 + $0xb4] sm:$0xf0] }
  0xd6   : > { %801 = vmatmul.bf16.gmra.mxu0 %v2249_v35  ;;  %v2463_v35 = vld [vmem:[%s3055_s18 + $0x8] sm:$0xff] }
  0xd7   : > { %1048 = vmatpush.bf16.msra.mxu2 %v2463_v35 }
  0xdc   : > { %890 = vmatmul.bf16.gmra.mxu1 %v2253_v39  ;;  %v2462_v39 = vld [vmem:[%s3055_s18] sm:$0xff] }
  0xdd   : > { %1049 = vmatpush.bf16.msra.mxu2 %v2462_v39 }
  0xe6   : > { %806 = vmatmul.bf16.gmra.mxu0 %v2257_v54  ;;  %v2289_v54 = vor.u32 %v2445_v43, %v2288_v42 }
  0xec   : > { %895 = vmatmul.bf16.gmra.mxu1 %v2261_v55  ;;  %v2293_v55 = vor.u32 %v2444_v48, %v2290_v49 }
  0xf6   : > { %811 = vmatmul.bf16.gmra.mxu0 %v2265_v8  ;;  %v2298_v8 = vld [vmem:[%s4583_s0 + $0x88] sm:$0xf0] }
  0xf7   : > { %v2301_v16 = vor.u32 %v2446_v3, %v2298_v8  ;;  %v2451_v3 = vld [vmem:[%s4583_s0 + $0xa4] sm:$0xf0]  ;;  %v2450_v8 = vld [vmem:[%s4583_s0 + $0xa4] sm:$0xf] }
  0xfc   : > { %900 = vmatmul.bf16.gmra.mxu1 %v2269_v9  ;;  %v3289_v9 = vperm.slane %v3274_v60, 0 }
  0xfe   : > { %v591_v18 = vmul.f32 %v3289_v9, %v3157_v10  ;;  %v593_v39 = vmul.f32 %v3289_v9, %v3145_v4  ;;  %v594_v42 = vmul.f32 %v3289_v9, %v3147_v5  ;;  %v2314_v5 = vld [vmem:[%s4583_s0 + $0xa8] sm:$0xf0] }
 0x106   : > { %816 = vmatmul.bf16.gmra.mxu0 %v2273_v19  ;;  %v592_v19 = vmul.f32 %v3289_v9, %v3159_v11  ;;  %v2306_v11 = vld [vmem:[%s4583_s0 + $0x98] sm:$0xf0] }
 0x10c   : > { %905 = vmatmul.bf16.gmra.mxu1 %v2277_v20 }
 0x116   : > { %821 = vmatmul.bf16.gmra.mxu0 %v2281_v28  ;;  %v2448_v28 = vld [vmem:[%s4583_s0 + $0x94] sm:$0xf] }
 0x117   : > { %v2309_v31 = vor.u32 %v2448_v28, %v2306_v11  ;;  %v2321_v28 = vor.u32 %v2453_v27, %v2320_v26 }
 0x11c   : > { %910 = vmatmul.bf16.gmra.mxu1 %v2285_v30 }
 0x126   : > { %826 = vmatmul.bf16.gmra.mxu0 %v2289_v54 }
 0x12c   : > { %915 = vmatmul.bf16.gmra.mxu1 %v2293_v55 }
 0x133   : > { %v792_v15 = vpop.f32.mrf.mxu0 }
 0x134   : > { %v793_v20 = vadd.f32 %v792_v15, %v591_v18  ;;  %v595_v18 = vmul.f32 %v3289_v9, %v3133_v62 }
 0x136   : > { %831 = vmatmul.bf16.gmra.mxu0 %v2297_v14  ;;  %v2313_v14 = vor.u32 %v2451_v3, %v2312_v2  ;;  %v2454_v2 = vld [vmem:[%s4583_s0 + $0xc4] sm:$0xf] }
 0x139   : > { %v881_v17 = vpop.f32.mrf.mxu1 }
 0x13a   : > { %v882_v24 = vadd.f32 %v881_v17, %v793_v20 }
 0x13b   : > { %v794_v21 = vpop.f32.mrf.mxu0 }
 0x13c   : > { %920 = vmatmul.bf16.gmra.mxu1 %v2301_v16  ;;  %v795_v22 = vadd.f32 %v794_v21, %v592_v19  ;;  %v2317_v16 = vor.u32 %v2450_v8, %v2314_v5  ;;  %v596_v19 = vmul.f32 %v3289_v9, %v3135_v63  ;;  %v2322_v63 = vld [vmem:[%s4583_s0 + $0xb8] sm:$0xf0] }
 0x141   : > { %v883_v23 = vpop.f32.mrf.mxu1 }
 0x142   : > { %v884_v25 = vadd.f32 %v883_v23, %v795_v22 }
 0x143   : > { %v797_v30 = vpop.f32.mrf.mxu0 }
 0x144   : > { %v961_v10 = vpack.c.bf16 %v884_v25, %v882_v24  ;;  %v798_v43 = vadd.f32 %v797_v30, %v593_v39 }
 0x146   : > { %1050 = vmatmul.bf16.vlgmr.msra.gmra.mxu2 %v961_v10  ;;  %836 = vmatmul.bf16.gmra.mxu0 %v2305_v29  ;;  %v2452_v10 = vld [vmem:[%s4583_s0 + $0xb4] sm:$0xf] }
 0x147   : > { %v2325_v29 = vor.u32 %v2452_v10, %v2322_v63  ;;  %v601_v10 = vmul.f32 %v3289_v9, %v3097_v44  ;;  %v602_v63 = vmul.f32 %v3289_v9, %v3099_v45  ;;  %v2459_v44 = vld [vmem:[%s4583_s0 + $0xe4] sm:$0xf0]  ;;  %v2458_v45 = vld [vmem:[%s4583_s0 + $0xe4] sm:$0xf] }
 0x149   : > { %v886_v35 = vpop.f32.mrf.mxu1 }
 0x14a   : > { %v887_v55 = vadd.f32 %v886_v35, %v798_v43  ;;  %v598_v35 = vmul.f32 %v3289_v9, %v3123_v57  ;;  %v2330_v57 = vld [vmem:[%s4583_s0 + $0xc8] sm:$0xf0] }
 0x14b   : > { %v799_v48 = vpop.f32.mrf.mxu0  ;;  %v2333_v8 = vor.u32 %v2454_v2, %v2330_v57  ;;  %v2476_v2 = vld [vmem:[%s3063_s7 + $0x30] sm:$0xff]  ;;  %v604_v57 = vmul.f32 %v3289_v9, %v3085_v38 }
 0x14c   : > { %925 = vmatmul.bf16.gmra.mxu1 %v2309_v31  ;;  %v800_v49 = vadd.f32 %v799_v48, %v594_v42  ;;  %v597_v31 = vmul.f32 %v3289_v9, %v3121_v56 }
 0x151   : > { %v888_v54 = vpop.f32.mrf.mxu1 }
 0x152   : > { %v889_v61 = vadd.f32 %v888_v54, %v800_v49 }
 0x153   : > { %v802_v15 = vpop.f32.mrf.mxu0 }
 0x154   : > { %v962_v4 = vpack.c.bf16 %v889_v61, %v887_v55  ;;  %v803_v20 = vadd.f32 %v802_v15, %v595_v18  ;;  %v2328_v55 = vld [vmem:[%s4583_s0 + $0xc0] sm:$0xf]  ;;  %v2455_v61 = vld [vmem:[%s4583_s0 + $0xc4] sm:$0xf0]  ;;  %v600_v15 = vmul.f32 %v3289_v9, %v3111_v51  ;;  %v2338_v51 = vld [vmem:[%s4583_s0 + $0xd8] sm:$0xf0] }
 0x155   : > { %v2329_v3 = vor.u32 %v2455_v61, %v2328_v55  ;;  %v2477_v61 = vld [vmem:[%s3063_s7 + $0x38] sm:$0xff] }
 0x156   : > { %1055 = vmatmul.bf16.gmra.mxu2 %v962_v4  ;;  %841 = vmatmul.bf16.gmra.mxu0 %v2313_v14  ;;  %v599_v14 = vmul.f32 %v3289_v9, %v3109_v50 }
 0x157   : > { %1244 = vmatpush.bf16.msra.mxu3 %v2477_v61 }
 0x159   : > { %v891_v17 = vpop.f32.mrf.mxu1 }
 0x15a   : > { %v892_v24 = vadd.f32 %v891_v17, %v803_v20 }
 0x15b   : > { %v804_v21 = vpop.f32.mrf.mxu0  ;;  %1245 = vmatpush.bf16.msra.mxu3 %v2476_v2  ;;  %v609_v2 = vmul.f32 %v3289_v9, %v3149_v6 }
 0x15c   : > { %930 = vmatmul.bf16.gmra.mxu1 %v2317_v16  ;;  %v805_v22 = vadd.f32 %v804_v21, %v596_v19 }
 0x161   : > { %v893_v23 = vpop.f32.mrf.mxu1 }
 0x162   : > { %v894_v25 = vadd.f32 %v893_v23, %v805_v22  ;;  %v2336_v22 = vld [vmem:[%s4583_s0 + $0xd0] sm:$0xf]  ;;  %v2457_v23 = vld [vmem:[%s4583_s0 + $0xd4] sm:$0xf0] }
 0x163   : > { %v807_v11 = vpop.f32.mrf.mxu0 }
 0x164   : > { %v963_v62 = vpack.c.bf16 %v894_v25, %v892_v24  ;;  %v808_v39 = vadd.f32 %v807_v11, %v597_v31  ;;  %v2456_v24 = vld [vmem:[%s4583_s0 + $0xd4] sm:$0xf]  ;;  %v2337_v25 = vor.u32 %v2457_v23, %v2336_v22 }
 0x165   : > { %v2341_v27 = vor.u32 %v2456_v24, %v2338_v51  ;;  %v2473_v24 = vld [vmem:[%s3063_s7 + $0x18] sm:$0xff]  ;;  %v605_v51 = vmul.f32 %v3289_v9, %v3073_v32 }
 0x166   : > { %1060 = vmatmul.bf16.gmra.mxu2 %v963_v62  ;;  %846 = vmatmul.bf16.gmra.mxu0 %v2321_v28 }
 0x169   : > { %v896_v30 = vpop.f32.mrf.mxu1 }
 0x16a   : > { %v897_v49 = vadd.f32 %v896_v30, %v808_v39  ;;  %v2344_v39 = vld [vmem:[%s4583_s0 + $0xe0] sm:$0xf] }
 0x16b   : > { %v809_v42 = vpop.f32.mrf.mxu0 }
 0x16c   : > { %935 = vmatmul.bf16.gmra.mxu1 %v2325_v29  ;;  %v810_v43 = vadd.f32 %v809_v42, %v598_v35 }
 0x171   : > { %v898_v48 = vpop.f32.mrf.mxu1 }
 0x172   : > { %v899_v54 = vadd.f32 %v898_v48, %v810_v43  ;;  %v2346_v43 = vld [vmem:[%s4583_s0 + $0xe8] sm:$0xf0]  ;;  %v2345_v48 = vor.u32 %v2459_v44, %v2344_v39  ;;  %v607_v39 = vmul.f32 %v3289_v9, %v3161_v12  ;;  %v610_v12 = vmul.f32 %v3289_v9, %v3151_v7 }
 0x173   : > { %v812_v4 = vpop.f32.mrf.mxu0 }
 0x174   : > { %v964_v56 = vpack.c.bf16 %v899_v54, %v897_v49  ;;  %v813_v16 = vadd.f32 %v812_v4, %v599_v14  ;;  %v2349_v54 = vor.u32 %v2458_v45, %v2346_v43  ;;  %v2475_v14 = vld [vmem:[%s3063_s7 + $0x28] sm:$0xff] }
 0x175   : > { %1246 = vmatpush.bf16.msra.mxu3 %v2475_v14 }
 0x176   : > { %1065 = vmatmul.bf16.gmra.mxu2 %v964_v56  ;;  %851 = vmatmul.bf16.gmra.mxu0 %v2329_v3  ;;  %v603_v56 = vmul.f32 %v3289_v9, %v3083_v37  ;;  %v2352_v37 = vld [vmem:[%s4583_s0 + $0xf0] sm:$0xf] }
 0x179   : > { %v901_v5 = vpop.f32.mrf.mxu1 }
 0x17a   : > { %v902_v20 = vadd.f32 %v901_v5, %v813_v16 }
 0x17b   : > { %v814_v17 = vpop.f32.mrf.mxu0 }
 0x17c   : > { %940 = vmatmul.bf16.gmra.mxu1 %v2333_v8  ;;  %v815_v18 = vadd.f32 %v814_v17, %v600_v15  ;;  %v2474_v17 = vld [vmem:[%s3063_s7 + $0x20] sm:$0xff] }
 0x17d   : > { %1247 = vmatpush.bf16.msra.mxu3 %v2474_v17 }
 0x181   : > { %v903_v19 = vpop.f32.mrf.mxu1  ;;  %1248 = vmatpush.bf16.msra.mxu3 %v2473_v24  ;;  %v612_v24 = vmul.f32 %v3289_v9, %v3139_v1  ;;  %v1368_v1 = vld [vmem:[%s4585_s2 + $0x18] sm:$0xff] }
 0x182   : > { %v904_v21 = vadd.f32 %v903_v19, %v815_v18  ;;  %v2461_v18 = vld [vmem:[%s4583_s0 + $0xf4] sm:$0xf0]  ;;  %v2460_v19 = vld [vmem:[%s4583_s0 + $0xf4] sm:$0xf] }
 0x183   : > { %v817_v26 = vpop.f32.mrf.mxu0 }
 0x184   : > { %v965_v50 = vpack.c.bf16 %v904_v21, %v902_v20  ;;  %v818_v28 = vadd.f32 %v817_v26, %v601_v10  ;;  %v2354_v20 = vld [vmem:[%s4583_s0 + $0xf8] sm:$0xf0]  ;;  %v2353_v21 = vor.u32 %v2461_v18, %v2352_v37  ;;  %v2472_v26 = vld [vmem:[%s3063_s7 + $0x10] sm:$0xff] }
 0x185   : > { %v2357_v23 = vor.u32 %v2460_v19, %v2354_v20  ;;  %1249 = vmatpush.bf16.msra.mxu3 %v2472_v26  ;;  %v1366_v19 = vld [vmem:[%s4585_s2 + $0x8] sm:$0xff] }
 0x186   : > { %1070 = vmatmul.bf16.gmra.mxu2 %v965_v50  ;;  %856 = vmatmul.bf16.gmra.mxu0 %v2337_v25  ;;  %v606_v25 = vmul.f32 %v3289_v9, %v3075_v33  ;;  %v608_v33 = vmul.f32 %v3289_v9, %v3163_v13  ;;  %v1365_v13 = vld [vmem:[%s4585_s2] sm:$0xff] }
 0x189   : > { %v906_v62 = vpop.f32.mrf.mxu1 }
 0x18a   : > { %v907_v31 = vadd.f32 %v906_v62, %v818_v28  ;;  %v2471_v28 = vld [vmem:[%s3063_s7 + $0x8] sm:$0xff] }
 0x18b   : > { %v819_v11 = vpop.f32.mrf.mxu0  ;;  %1250 = vmatpush.bf16.msra.mxu3 %v2471_v28 }
 0x18c   : > { %945 = vmatmul.bf16.gmra.mxu1 %v2341_v27  ;;  %v820_v29 = vadd.f32 %v819_v11, %v602_v63 }
 0x191   : > { %v908_v30 = vpop.f32.mrf.mxu1 }
 0x192   : > { %v909_v35 = vadd.f32 %v908_v30, %v820_v29 }
 0x193   : > { %v822_v49 = vpop.f32.mrf.mxu0 }
 0x194   : > { %v966_v42 = vpack.c.bf16 %v909_v35, %v907_v31  ;;  %v823_v3 = vadd.f32 %v822_v49, %v603_v56  ;;  %v2470_v31 = vld [vmem:[%s3063_s7] sm:$0xff] }
 0x195   : > { %1251 = vmatpush.bf16.msra.mxu3 %v2470_v31 }
 0x196   : > { %1075 = vmatmul.bf16.gmra.mxu2 %v966_v42  ;;  %861 = vmatmul.bf16.gmra.mxu0 %v2345_v48 }
 0x199   : > { %v911_v55 = vpop.f32.mrf.mxu1 }
 0x19a   : > { %v912_v15 = vadd.f32 %v911_v55, %v823_v3  ;;  %v2838_v3 = vmov 0  }
 0x19b   : > { %v824_v4 = vpop.f32.mrf.mxu0  ;;  %2568 = vset.pattern.permute.xlu0 %v2838_v3  ;;  %2569 = vset.pattern.permute.xlu1 %v2838_v3 }
 0x19c   : > { %950 = vmatmul.bf16.gmra.mxu1 %v2349_v54  ;;  %v825_v8 = vadd.f32 %v824_v4, %v604_v57  ;;  %v3422_v57 = vperm.slane %v3274_v60, 1  ;;  %1399 = vperm.xlu0 %2568, %v1365_v13  }
 0x19d   : > { %2570 = vset.pattern.permute.xlu2 %v2838_v3 }
 0x1a1   : > { %v913_v5 = vpop.f32.mrf.mxu1 }
 0x1a2   : > { %v914_v16 = vadd.f32 %v913_v5, %v825_v8 }
 0x1a3   : > { %v827_v22 = vpop.f32.mrf.mxu0 }
 0x1a4   : > { %v967_v38 = vpack.c.bf16 %v914_v16, %v912_v15  ;;  %v828_v27 = vadd.f32 %v827_v22, %v605_v51  ;;  %1404 = vperm.xlu0 %2568, %v1366_v19   ;;  %v1367_v51 = vld [vmem:[%s4585_s2 + $0x10] sm:$0xff] }
 0x1a5   : > { %1409 = vperm.xlu1 %2569, %v1367_v51  }
 0x1a6   : > { %1080 = vmatmul.bf16.gmra.mxu2 %v967_v38  ;;  %866 = vmatmul.bf16.gmra.mxu0 %v2353_v21 }
 0x1a9   : > { %v916_v50 = vpop.f32.mrf.mxu1 }
 0x1aa   : > { %v917_v11 = vadd.f32 %v916_v50, %v828_v27  ;;  %v611_v50 = vmul.f32 %v3289_v9, %v3137_v0 }
 0x1ab   : > { %v829_v62 = vpop.f32.mrf.mxu0 }
 0x1ac   : > { %955 = vmatmul.bf16.gmra.mxu1 %v2357_v23  ;;  %v830_v10 = vadd.f32 %v829_v62, %v606_v25 }
 0x1ad   : > { %1414 = vperm.xlu1 %2569, %v1368_v1  }
 0x1b1   : > { %v918_v63 = vpop.f32.mrf.mxu1 }
 0x1b2   : > { %v919_v29 = vadd.f32 %v918_v63, %v830_v10 }
 0x1b3   : > { %v832_v32 = vpop.f32.mrf.mxu0 }
 0x1b4   : > { %v968_v30 = vpack.c.bf16 %v919_v29, %v917_v11  ;;  %v833_v44 = vadd.f32 %v832_v32, %v607_v39 }
 0x1b6   : > { %1085 = vmatmul.bf16.gmra.mxu2 %v968_v30 }
 0x1b9   : > { %v921_v35 = vpop.f32.mrf.mxu1 }
 0x1ba   : > { %v922_v48 = vadd.f32 %v921_v35, %v833_v44  ;;  %v613_v44 = vmul.f32 %v3289_v9, %v3125_v58 }
 0x1bb   : > { %v834_v42 = vpop.f32.mrf.mxu0 }
 0x1bc   : > { %v835_v45 = vadd.f32 %v834_v42, %v608_v33  ;;  %v614_v42 = vmul.f32 %v3289_v9, %v3127_v59 }
 0x1c1   : > { %v923_v43 = vpop.f32.mrf.mxu1 }
 0x1c2   : > { %v924_v49 = vadd.f32 %v923_v43, %v835_v45 }
 0x1c3   : > { %v837_v55 = vpop.f32.mrf.mxu0 }
 0x1c4   : > { %v969_v54 = vpack.c.bf16 %v924_v49, %v922_v48  ;;  %v838_v4 = vadd.f32 %v837_v55, %v609_v2 }
 0x1c6   : > { %1090 = vmatmul.bf16.gmra.mxu2 %v969_v54 }
 0x1c9   : > { %v926_v61 = vpop.f32.mrf.mxu1  ;;  %v1051_v56 = vpop.f32.mrf.mxu2 }
 0x1ca   : > { %v1052_v5 = vadd.f32 %v1051_v56, %v3422_v57  ;;  %v927_v16 = vadd.f32 %v926_v61, %v838_v4 }
 0x1cb   : > { %v839_v8 = vpop.f32.mrf.mxu0 }
 0x1cc   : > { %v840_v6 = vadd.f32 %v839_v8, %v610_v12  ;;  %v1131_v37 = vmax.f32 %v1052_v5, 0.0  ;;  %v615_v5 = vmul.f32 %v3289_v9, %v3113_v52 }
 0x1d1   : > { %v928_v14 = vpop.f32.mrf.mxu1  ;;  %v1053_v15 = vpop.f32.mrf.mxu2 }
 0x1d2   : > { %v929_v17 = vadd.f32 %v928_v14, %v840_v6  ;;  %v1054_v7 = vadd.f32 %v1053_v15, %v3422_v57  ;;  %v616_v6 = vmul.f32 %v3289_v9, %v3115_v53  ;;  %v1371_v14 = vld [vmem:[%s4585_s2 + $0x30] sm:$0xff]  ;;  %v1369_v53 = vld [vmem:[%s4585_s2 + $0x20] sm:$0xff] }
 0x1d3   : > { %v842_v21 = vpop.f32.mrf.mxu0  ;;  %1429 = vperm.xlu0 %2568, %v1371_v14   ;;  %1419 = vperm.xlu2 %2570, %v1369_v53   ;;  %v621_v14 = vmul.f32 %v3289_v9, %v3077_v34 }
 0x1d4   : > { %v1132_v18 = vmax.f32 %v1054_v7, 0.0  ;;  %v970_v38 = vpack.c.bf16 %v929_v17, %v927_v16  ;;  %v843_v25 = vadd.f32 %v842_v21, %v611_v50 }
 0x1d6   : > { %1095 = vmatmul.bf16.gmra.mxu2 %v970_v38  ;;  %v1163_v20 = vpack.c.bf16 %v1132_v18, %v1131_v37 }
 0x1d8   : > { %1252 = vmatmul.bf16.vlgmr.msra.gmra.mxu3 %v1163_v20 }
 0x1d9   : > { %v931_v22 = vpop.f32.mrf.mxu1  ;;  %v1056_v23 = vpop.f32.mrf.mxu2 }
 0x1da   : > { %v1057_v27 = vadd.f32 %v1056_v23, %v3422_v57  ;;  %v932_v28 = vadd.f32 %v931_v22, %v843_v25  ;;  %v1372_v23 = vld [vmem:[%s4585_s2 + $0x38] sm:$0xff] }
 0x1db   : > { %v844_v26 = vpop.f32.mrf.mxu0  ;;  %1434 = vperm.xlu1 %2569, %v1372_v23  }
 0x1dc   : > { %v845_v62 = vadd.f32 %v844_v26, %v612_v24  ;;  %v1133_v0 = vmax.f32 %v1057_v27, 0.0  ;;  %v617_v26 = vmul.f32 %v3289_v9, %v3101_v46  ;;  %v618_v27 = vmul.f32 %v3289_v9, %v3103_v47  ;;  %v1374_v47 = vld [vmem:[%s4585_s2 + $0x48] sm:$0xff] }
 0x1dd   : > { %1444 = vperm.xlu0 %2568, %v1374_v47  }
 0x1e1   : > { %v933_v10 = vpop.f32.mrf.mxu1  ;;  %v1058_v63 = vpop.f32.mrf.mxu2 }
 0x1e2   : > { %v934_v11 = vadd.f32 %v933_v10, %v845_v62  ;;  %v1059_v29 = vadd.f32 %v1058_v63, %v3422_v57  ;;  %v1370_v62 = vld [vmem:[%s4585_s2 + $0x28] sm:$0xff] }
 0x1e3   : > { %v847_v35 = vpop.f32.mrf.mxu0  ;;  %1424 = vperm.xlu2 %2570, %v1370_v62   ;;  %v1380_v62 = vld [vmem:[%s4585_s2 + $0x78] sm:$0xff] }
 0x1e4   : > { %v1134_v30 = vmax.f32 %v1059_v29, 0.0  ;;  %v971_v31 = vpack.c.bf16 %v934_v11, %v932_v28  ;;  %v848_v45 = vadd.f32 %v847_v35, %v613_v44 }
 0x1e6   : > { %1100 = vmatmul.bf16.gmra.mxu2 %v971_v31  ;;  %v1164_v32 = vpack.c.bf16 %v1134_v30, %v1133_v0 }
 0x1e8   : > { %1257 = vmatmul.bf16.gmra.mxu3 %v1164_v32 }
 0x1e9   : > { %v936_v39 = vpop.f32.mrf.mxu1  ;;  %v1061_v33 = vpop.f32.mrf.mxu2 }
 0x1ea   : > { %v1062_v48 = vadd.f32 %v1061_v33, %v3422_v57  ;;  %v937_v61 = vadd.f32 %v936_v39, %v848_v45  ;;  %v619_v45 = vmul.f32 %v3289_v9, %v3089_v40 }
 0x1eb   : > { %v849_v43 = vpop.f32.mrf.mxu0 }
 0x1ec   : > { %v850_v49 = vadd.f32 %v849_v43, %v614_v42  ;;  %v1135_v12 = vmax.f32 %v1062_v48, 0.0  ;;  %v620_v43 = vmul.f32 %v3289_v9, %v3091_v41  ;;  %v1375_v48 = vld [vmem:[%s4585_s2 + $0x50] sm:$0xff]  ;;  %v1373_v41 = vld [vmem:[%s4585_s2 + $0x40] sm:$0xff] }
 0x1ed   : > { %1449 = vperm.xlu1 %2569, %v1375_v48   ;;  %1439 = vperm.xlu2 %2570, %v1373_v41  }
 0x1f1   : > { %v938_v54 = vpop.f32.mrf.mxu1  ;;  %v1063_v55 = vpop.f32.mrf.mxu2 }
 0x1f2   : > { %v939_v56 = vadd.f32 %v938_v54, %v850_v49  ;;  %v1064_v2 = vadd.f32 %v1063_v55, %v3422_v57 }
 0x1f3   : > { %v852_v58 = vpop.f32.mrf.mxu0 }
 0x1f4   : > { %v1136_v13 = vmax.f32 %v1064_v2, 0.0  ;;  %v972_v3 = vpack.c.bf16 %v939_v56, %v937_v61  ;;  %v853_v15 = vadd.f32 %v852_v58, %v615_v5 }
 0x1f6   : > { %1105 = vmatmul.bf16.gmra.mxu2 %v972_v3  ;;  %v1165_v4 = vpack.c.bf16 %v1136_v13, %v1135_v12 }
 0x1f8   : > { %1262 = vmatmul.bf16.gmra.mxu3 %v1165_v4 }
 0x1f9   : > { %v941_v8 = vpop.f32.mrf.mxu1  ;;  %v1066_v59 = vpop.f32.mrf.mxu2 }
 0x1fa   : > { %v1067_v17 = vadd.f32 %v1066_v59, %v3422_v57  ;;  %v942_v38 = vadd.f32 %v941_v8, %v853_v15  ;;  %v622_v15 = vmul.f32 %v3289_v9, %v3081_v36  ;;  %v1378_v36 = vld [vmem:[%s4585_s2 + $0x68] sm:$0xff] }
 0x1fb   : > { %v854_v16 = vpop.f32.mrf.mxu0  ;;  %1464 = vperm.xlu1 %2569, %v1378_v36  }
 0x1fc   : > { %v855_v7 = vadd.f32 %v854_v16, %v616_v6  ;;  %v1137_v52 = vmax.f32 %v1067_v17, 0.0  ;;  %v1377_v16 = vld [vmem:[%s4585_s2 + $0x60] sm:$0xff] }
 0x1fd   : > { %1459 = vperm.xlu0 %2568, %v1377_v16  }
 0x201   : > { %v943_v37 = vpop.f32.mrf.mxu1  ;;  %v1068_v18 = vpop.f32.mrf.mxu2 }
 0x202   : > { %v944_v19 = vadd.f32 %v943_v37, %v855_v7  ;;  %v1069_v20 = vadd.f32 %v1068_v18, %v3422_v57 }
 0x203   : > { %v857_v24 = vpop.f32.mrf.mxu0 }
 0x204   : > { %v973_v21 = vpack.c.bf16 %v944_v19, %v942_v38  ;;  %v1138_v22 = vmax.f32 %v1069_v20, 0.0  ;;  %v858_v10 = vadd.f32 %v857_v24, %v617_v26 }
 0x205   : > { %1474 = vperm.xlu0 %2568, %v1380_v62  }
 0x206   : > { %1110 = vmatmul.bf16.gmra.mxu2 %v973_v21  ;;  %v1166_v50 = vpack.c.bf16 %v1138_v22, %v1137_v52 }
 0x208   : > { %1267 = vmatmul.bf16.gmra.mxu3 %v1166_v50  ;;  %v1376_v50 = vld [vmem:[%s4585_s2 + $0x58] sm:$0xff] }
 0x209   : > { %v946_v51 = vpop.f32.mrf.mxu1  ;;  %v1071_v25 = vpop.f32.mrf.mxu2  ;;  %1454 = vperm.xlu2 %2570, %v1376_v50   ;;  %v1394_v50 = vld [vmem:[%s4585_s2 + $0xe8] sm:$0xff] }
 0x20a   : > { %v1072_v28 = vadd.f32 %v1071_v25, %v3422_v57  ;;  %v947_v30 = vadd.f32 %v946_v51, %v858_v10 }
 0x20b   : > { %v859_v63 = vpop.f32.mrf.mxu0 }
 0x20c   : > { %v860_v11 = vadd.f32 %v859_v63, %v618_v27  ;;  %v1139_v46 = vmax.f32 %v1072_v28, 0.0  ;;  %v1381_v28 = vld [vmem:[%s4585_s2 + $0x80] sm:$0xff] }
 0x20d   : > { %1479 = vperm.xlu1 %2569, %v1381_v28  }
 0x211   : > { %v948_v29 = vpop.f32.mrf.mxu1  ;;  %v1073_v0 = vpop.f32.mrf.mxu2 }
 0x212   : > { %v949_v31 = vadd.f32 %v948_v29, %v860_v11  ;;  %v1074_v1 = vadd.f32 %v1073_v0, %v3422_v57 }
 0x213   : > { %v862_v33 = vpop.f32.mrf.mxu0 }
 0x214   : > { %v974_v32 = vpack.c.bf16 %v949_v31, %v947_v30  ;;  %v1140_v35 = vmax.f32 %v1074_v1, 0.0  ;;  %v863_v49 = vadd.f32 %v862_v33, %v619_v45  ;;  %v1383_v30 = vld [vmem:[%s4585_s2 + $0x90] sm:$0xff]  ;;  %v1386_v33 = vld [vmem:[%s4585_s2 + $0xa8] sm:$0xff] }
 0x215   : > { %1489 = vperm.xlu0 %2568, %v1383_v30  }
 0x216   : > { %1115 = vmatmul.bf16.gmra.mxu2 %v974_v32  ;;  %v1167_v39 = vpack.c.bf16 %v1140_v35, %v1139_v46  ;;  %v1379_v46 = vld [vmem:[%s4585_s2 + $0x70] sm:$0xff]  ;;  %v1384_v32 = vld [vmem:[%s4585_s2 + $0x98] sm:$0xff] }
 0x217   : > { %1469 = vperm.xlu2 %2570, %v1379_v46   ;;  %1494 = vperm.xlu1 %2569, %v1384_v32  }
 0x218   : > { %1272 = vmatmul.bf16.gmra.mxu3 %v1167_v39 }
 0x219   : > { %v951_v44 = vpop.f32.mrf.mxu1  ;;  %v1076_v42 = vpop.f32.mrf.mxu2 }
 0x21a   : > { %v1077_v55 = vadd.f32 %v1076_v42, %v3422_v57  ;;  %v952_v12 = vadd.f32 %v951_v44, %v863_v49  ;;  %v1387_v44 = vld [vmem:[%s4585_s2 + $0xb0] sm:$0xff]  ;;  %v1389_v49 = vld [vmem:[%s4585_s2 + $0xc0] sm:$0xff] }
 0x21b   : > { %v864_v54 = vpop.f32.mrf.mxu0 }
 0x21c   : > { %v865_v61 = vadd.f32 %v864_v54, %v620_v43  ;;  %v1141_v40 = vmax.f32 %v1077_v55, 0.0 }
 0x21d   : > { %1504 = vperm.xlu0 %2568, %v1386_v33  }
 0x21f   : > { %1509 = vperm.xlu1 %2569, %v1387_v44  }
 0x221   : > { %v953_v56 = vpop.f32.mrf.mxu1  ;;  %v1078_v2 = vpop.f32.mrf.mxu2 }
 0x222   : > { %v954_v13 = vadd.f32 %v953_v56, %v865_v61  ;;  %v1079_v3 = vadd.f32 %v1078_v2, %v3422_v57  ;;  %v1390_v61 = vld [vmem:[%s4585_s2 + $0xc8] sm:$0xff] }
 0x223   : > { %v867_v59 = vpop.f32.mrf.mxu0 }
 0x224   : > { %v975_v4 = vpack.c.bf16 %v954_v13, %v952_v12  ;;  %v1142_v58 = vmax.f32 %v1079_v3, 0.0  ;;  %v868_v17 = vadd.f32 %v867_v59, %v621_v14  ;;  %v1392_v13 = vld [vmem:[%s4585_s2 + $0xd8] sm:$0xff]  ;;  %v1382_v3 = vld [vmem:[%s4585_s2 + $0x88] sm:$0xff]  ;;  %v1395_v59 = vld [vmem:[%s4585_s2 + $0xf0] sm:$0xff] }
 0x225   : > { %1519 = vperm.xlu0 %2568, %v1389_v49   ;;  %1484 = vperm.xlu2 %2570, %v1382_v3   ;;  %v1396_v14 = vld [vmem:[%s4585_s2 + $0xf8] sm:$0xff] }
 0x226   : > { %1120 = vmatmul.bf16.gmra.mxu2 %v975_v4  ;;  %v1168_v8 = vpack.c.bf16 %v1142_v58, %v1141_v40  ;;  %v1393_v40 = vld [vmem:[%s4585_s2 + $0xe0] sm:$0xff] }
 0x227   : > { %1524 = vperm.xlu1 %2569, %v1390_v61  }
 0x228   : > { %1277 = vmatmul.bf16.gmra.mxu3 %v1168_v8 }
 0x229   : > { %v956_v5 = vpop.f32.mrf.mxu1  ;;  %v1081_v6 = vpop.f32.mrf.mxu2 }
 0x22a   : > { %v1082_v37 = vadd.f32 %v1081_v6, %v3422_v57  ;;  %v957_v20 = vadd.f32 %v956_v5, %v868_v17  ;;  %v1385_v17 = vld [vmem:[%s4585_s2 + $0xa0] sm:$0xff] }
 0x22b   : > { %v869_v7 = vpop.f32.mrf.mxu0 }
 0x22c   : > { %v870_v18 = vadd.f32 %v869_v7, %v622_v15  ;;  %v1143_v34 = vmax.f32 %v1082_v37, 0.0 }
 0x22d   : > { %1534 = vperm.xlu0 %2568, %v1392_v13   ;;  %1499 = vperm.xlu2 %2570, %v1385_v17  }
 0x22f   : > { %1539 = vperm.xlu1 %2569, %v1393_v40  }
 0x231   : > { %v958_v38 = vpop.f32.mrf.mxu1  ;;  %v1083_v19 = vpop.f32.mrf.mxu2 }
 0x232   : > { %v959_v52 = vadd.f32 %v958_v38, %v870_v18  ;;  %v1084_v21 = vadd.f32 %v1083_v19, %v3422_v57  ;;  %v1388_v38 = vld [vmem:[%s4585_s2 + $0xb8] sm:$0xff] }
 0x234   : > { %v976_v22 = vpack.c.bf16 %v959_v52, %v957_v20  ;;  %v1144_v53 = vmax.f32 %v1084_v21, 0.0 }
 0x235   : > { %1549 = vperm.xlu0 %2568, %v1395_v59   ;;  %1514 = vperm.xlu2 %2570, %v1388_v38  }
 0x236   : > { %1125 = vmatmul.bf16.gmra.mxu2 %v976_v22  ;;  %v1169_v9 = vpack.c.bf16 %v1144_v53, %v1143_v34  ;;  %v1391_v53 = vld [vmem:[%s4585_s2 + $0xd0] sm:$0xff] }
 0x237   : > { %1554 = vperm.xlu1 %2569, %v1396_v14  }
 0x238   : > { %1282 = vmatmul.bf16.gmra.mxu3 %v1169_v9 }
 0x239   : > { %v1086_v23 = vpop.f32.mrf.mxu2 }
 0x23a   : > { %v1087_v24 = vadd.f32 %v1086_v23, %v3422_v57 }
 0x23c   : > { %v1145_v26 = vmax.f32 %v1087_v24, 0.0 }
 0x23d   : > { %1529 = vperm.xlu2 %2570, %v1391_v53  }
 0x241   : > { %v1088_v51 = vpop.f32.mrf.mxu2 }
 0x242   : > { %v1089_v25 = vadd.f32 %v1088_v51, %v3422_v57 }
 0x244   : > { %v1146_v27 = vmax.f32 %v1089_v25, 0.0 }
 0x245   : > { %1544 = vperm.xlu2 %2570, %v1394_v50  }
 0x246   : > { %v1170_v10 = vpack.c.bf16 %v1146_v27, %v1145_v26 }
 0x248   : > { %1287 = vmatmul.bf16.gmra.mxu3 %v1170_v10 }
 0x249   : > { %v1091_v63 = vpop.f32.mrf.mxu2 }
 0x24a   : > { %v1092_v11 = vadd.f32 %v1091_v63, %v3422_v57 }
 0x24c   : > { %v1147_v31 = vmax.f32 %v1092_v11, 0.0 }
 0x251   : > { %v1093_v29 = vpop.f32.mrf.mxu2 }
 0x252   : > { %v1094_v0 = vadd.f32 %v1093_v29, %v3422_v57 }
 0x254   : > { %v1148_v1 = vmax.f32 %v1094_v0, 0.0 }
 0x256   : > { %v1171_v35 = vpack.c.bf16 %v1148_v1, %v1147_v31 }
 0x258   : > { %1292 = vmatmul.bf16.gmra.mxu3 %v1171_v35 }
 0x259   : > { %v1096_v47 = vpop.f32.mrf.mxu2 }
 0x25a   : > { %v1097_v42 = vadd.f32 %v1096_v47, %v3422_v57 }
 0x25b   : > { %v3525_v39 = vpop.f32.mrf.mxu3 }
 0x25c   : > { %v1149_v54 = vmax.f32 %v1097_v42, 0.0 }
 0x261   : > { %v1098_v45 = vpop.f32.mrf.mxu2 }
 0x262   : > { %v1099_v43 = vadd.f32 %v1098_v45, %v3422_v57 }
 0x263   : > { %v3535_v48 = vpop.f32.mrf.mxu3 }
 0x264   : > { %v1150_v55 = vmax.f32 %v1099_v43, 0.0 }
 0x266   : > { %v1172_v56 = vpack.c.bf16 %v1150_v55, %v1149_v54 }
 0x268   : > { %1297 = vmatmul.bf16.gmra.mxu3 %v1172_v56 }
 0x269   : > { %v1101_v2 = vpop.f32.mrf.mxu2 }
 0x26a   : > { %v1102_v4 = vadd.f32 %v1101_v2, %v3422_v57 }
 0x26b   : > { %v3543_v12 = vpop.f32.mrf.mxu3 }
 0x26c   : > { %v1151_v5 = vmax.f32 %v1102_v4, 0.0 }
 0x271   : > { %v1103_v58 = vpop.f32.mrf.mxu2 }
 0x272   : > { %v1104_v41 = vadd.f32 %v1103_v58, %v3422_v57 }
 0x273   : > { %v3556_v8 = vpop.f32.mrf.mxu3 }
 0x274   : > { %v1152_v6 = vmax.f32 %v1104_v41, 0.0 }
 0x276   : > { %v1173_v15 = vpack.c.bf16 %v1152_v6, %v1151_v5  ;;  %v3618_v6 = vpop.permute.xlu0 %1399 }
 0x278   : > { %1302 = vmatmul.bf16.gmra.mxu3 %v1173_v15  ;;  %v3624_v15 = vpop.permute.xlu2 %1419 }
 0x279   : > { %v1106_v16 = vpop.f32.mrf.mxu2 }
 0x27a   : > { %v1107_v37 = vadd.f32 %v1106_v16, %v3422_v57 }
 0x27b   : > { %v3567_v7 = vpop.f32.mrf.mxu3 }
 0x27c   : > { %v1153_v52 = vmax.f32 %v1107_v37, 0.0 }
 0x27e   : > { %v3626_v16 = vpop.permute.xlu0 %1404 }
 0x280   : > { %v3634_v38 = vpop.permute.xlu2 %1424 }
 0x281   : > { %v1108_v18 = vpop.f32.mrf.mxu2 }
 0x282   : > { %v1109_v19 = vadd.f32 %v1108_v18, %v3422_v57 }
 0x283   : > { %v3574_v20 = vpop.f32.mrf.mxu3 }
 0x284   : > { %v1154_v21 = vmax.f32 %v1109_v19, 0.0 }
 0x286   : > { %v1174_v34 = vpack.c.bf16 %v1154_v21, %v1153_v52  ;;  %v3632_v18 = vpop.permute.xlu0 %1429  ;;  %v3641_v21 = vperm.slane %v3274_v60, 2 }
 0x288   : > { %1307 = vmatmul.bf16.gmra.mxu3 %v1174_v34  ;;  %v3645_v34 = vadd.f32 %v3535_v48, %v3641_v21  ;;  %v3649_v53 = vpop.permute.xlu2 %1439  ;;  %v3659_v50 = vadd.f32 %v3543_v12, %v3641_v21  ;;  %v3666_v48 = vadd.f32 %v3556_v8, %v3641_v21 }
 0x289   : > { %v1111_v22 = vpop.f32.mrf.mxu2 }
 0x28a   : > { %v1112_v9 = vadd.f32 %v1111_v22, %v3422_v57 }
 0x28b   : > { %v3579_v36 = vpop.f32.mrf.mxu3 }
 0x28c   : > { %v1155_v25 = vmax.f32 %v1112_v9, 0.0 }
 0x28e   : > { %v3647_v22 = vpop.permute.xlu0 %1444 }
 0x28f   : > { %4701 = vst [vmem:[#allocation24_spill] sm:$0xff] %v3647_v22 }
 0x291   : > { %v1113_v23 = vpop.f32.mrf.mxu2 }
 0x292   : > { %v1114_v24 = vadd.f32 %v1113_v23, %v3422_v57  ;;  %v3655_v23 = vadd.f32 %v3525_v39, %v3641_v21  ;;  %v3672_v39 = vadd.f32 %v3567_v7, %v3641_v21 }
 0x293   : > { %v3586_v51 = vpop.f32.mrf.mxu3 }
 0x294   : > { %v1156_v26 = vmax.f32 %v1114_v24, 0.0  ;;  %v4615_v24 = vmax.f32 %v3645_v34, 0.0 }
 0x296   : > { %v1175_v27 = vpack.c.bf16 %v1156_v26, %v1155_v25  ;;  %v4618_v25 = vmax.f32 %v3655_v23, 0.0  ;;  %v4614_v26 = vmax.f32 %v3659_v50, 0.0  ;;  %v1558_v12 = vmul.f32 %v3626_v16, %v4615_v24  ;;  %v3682_v8 = vpop.permute.xlu0 %1459 }
 0x297   : > { %4703 = vst [vmem:[#allocation26_spill] sm:$0xff] %v3682_v8 }
 0x298   : > { %1312 = vmatmul.bf16.gmra.mxu3 %v1175_v27  ;;  %v4612_v27 = vmax.f32 %v3666_v48, 0.0  ;;  %v1557_v7 = vmul.f32 %v3618_v6, %v4618_v25 }
 0x299   : > { %v1116_v62 = vpop.f32.mrf.mxu2 }
 0x29a   : > { %v1117_v63 = vadd.f32 %v1116_v62, %v3422_v57  ;;  %v3680_v62 = vadd.f32 %v3574_v20, %v3641_v21  ;;  %v3697_v20 = vadd.f32 %v3579_v36, %v3641_v21 }
 0x29b   : > { %v3588_v10 = vpop.f32.mrf.mxu3 }
 0x29c   : > { %v1157_v0 = vmax.f32 %v1117_v63, 0.0  ;;  %v3684_v63 = vpop.permute.xlu2 %1454  ;;  %v4605_v36 = vmax.f32 %v3697_v20, 0.0 }
 0x29d   : > { %4704 = vst [vmem:[#allocation27_spill] sm:$0xff] %v3684_v63 }
 0x2a1   : > { %v1118_v28 = vpop.f32.mrf.mxu2 }
 0x2a2   : > { %v1119_v11 = vadd.f32 %v1118_v28, %v3422_v57 }
 0x2a3   : > { %v3592_v29 = vpop.f32.mrf.mxu3 }
 0x2a4   : > { %v1158_v30 = vmax.f32 %v1119_v11, 0.0 }
 0x2a6   : > { %v1176_v31 = vpack.c.bf16 %v1158_v30, %v1157_v0  ;;  %v4609_v0 = vmax.f32 %v3672_v39, 0.0 }
 0x2a8   : > { %1317 = vmatmul.bf16.gmra.mxu3 %v1176_v31  ;;  %v1589_v31 = vadd.f32 %v1558_v12, %v1557_v7 }
 0x2a9   : > { %v1121_v1 = vpop.f32.mrf.mxu2 }
 0x2aa   : > { %v1122_v32 = vadd.f32 %v1121_v1, %v3422_v57 }
 0x2ab   : > { %v3594_v46 = vpop.f32.mrf.mxu3 }
 0x2ac   : > { %v1159_v44 = vmax.f32 %v1122_v32, 0.0  ;;  %v4607_v32 = vmax.f32 %v3680_v62, 0.0  ;;  %v3737_v12 = vadd.f32 %v3594_v46, %v3641_v21 }
 0x2ae   : > { %v4608_v46 = vmax.f32 %v3737_v12, 0.0 }
 0x2b1   : > { %v1123_v35 = vpop.f32.mrf.mxu2 }
 0x2b2   : > { %v1124_v47 = vadd.f32 %v1123_v35, %v3422_v57  ;;  %v3707_v35 = vadd.f32 %v3586_v51, %v3641_v21  ;;  %v3723_v51 = vadd.f32 %v3592_v29, %v3641_v21 }
 0x2b3   : > { %v3598_v33 = vpop.f32.mrf.mxu3 }
 0x2b4   : > { %v1160_v42 = vmax.f32 %v1124_v47, 0.0 }
 0x2b6   : > { %v1177_v45 = vpack.c.bf16 %v1160_v42, %v1159_v44  ;;  %v1561_v44 = vmul.f32 %v3624_v15, %v4609_v0  ;;  %v3715_v42 = vadd.f32 %v3588_v10, %v3641_v21  ;;  %v1563_v10 = vmul.f32 %v3632_v18, %v4605_v36 }
 0x2b8   : > { %1322 = vmatmul.bf16.gmra.mxu3 %v1177_v45 }
 0x2b9   : > { %v1126_v43 = vpop.f32.mrf.mxu2 }
 0x2ba   : > { %v1127_v54 = vadd.f32 %v1126_v43, %v3422_v57  ;;  %v1562_v43 = vmul.f32 %v3634_v38, %v4607_v32 }
 0x2bb   : > { %v3600_v49 = vpop.f32.mrf.mxu3 }
 0x2bc   : > { %v1161_v2 = vmax.f32 %v1127_v54, 0.0  ;;  %v4603_v54 = vmax.f32 %v3707_v35, 0.0 }
 0x2c1   : > { %v1128_v55 = vpop.f32.mrf.mxu2 }
 0x2c2   : > { %v1129_v61 = vadd.f32 %v1128_v55, %v3422_v57  ;;  %v3620_v57 = vpop.permute.xlu1 %1409  ;;  %v3725_v55 = vpop.permute.xlu0 %1474 }
 0x2c3   : > { %v3604_v56 = vpop.f32.mrf.mxu3  ;;  %v1559_v11 = vmul.f32 %v3620_v57, %v4614_v26 }
 0x2c4   : > { %v1162_v13 = vmax.f32 %v1129_v61, 0.0  ;;  %v3727_v61 = vpop.permute.xlu2 %1469 }
 0x2c5   : > { %v1590_v47 = vadd.f32 %v1589_v31, %v1559_v11  ;;  %v4606_v31 = vmax.f32 %v3723_v51, 0.0 }
 0x2c6   : > { %v1178_v3 = vpack.c.bf16 %v1162_v13, %v1161_v2 }
 0x2c8   : > { %1327 = vmatmul.bf16.gmra.mxu3 %v1178_v3  ;;  %v4604_v3 = vmax.f32 %v3715_v42, 0.0 }
 0x2ca   : > { %v3630_v37 = vpop.permute.xlu1 %1414 }
 0x2cb   : > { %v3606_v40 = vpop.f32.mrf.mxu3  ;;  %v1560_v1 = vmul.f32 %v3630_v37, %v4612_v27 }
 0x2cd   : > { %v1591_v45 = vadd.f32 %v1590_v47, %v1560_v1  ;;  %v3747_v1 = vadd.f32 %v3598_v33, %v3641_v21  ;;  %v3763_v33 = vadd.f32 %v3604_v56, %v3641_v21 }
 0x2cf   : > { %v1592_v13 = vadd.f32 %v1591_v45, %v1561_v44  ;;  %v1565_v44 = vmul.f32 %v3649_v53, %v4604_v3  ;;  %v3755_v45 = vadd.f32 %v3600_v49, %v3641_v21  ;;  %v4613_v32 = vmax.f32 %v3763_v33, 0.0 }
 0x2d1   : > { %v1593_v29 = vadd.f32 %v1592_v13, %v1562_v43  ;;  %v1566_v13 = vmul.f32 %v3647_v22, %v4606_v31 }
 0x2d2   : > { %v3638_v52 = vpop.permute.xlu1 %1434 }
 0x2d3   : > { %v3608_v4 = vpop.f32.mrf.mxu3  ;;  %v1564_v11 = vmul.f32 %v3638_v52, %v4603_v54  ;;  %v1594_v47 = vadd.f32 %v1593_v29, %v1563_v10  ;;  %v4610_v54 = vmax.f32 %v3747_v1, 0.0  ;;  %v3765_v10 = vpop.permute.xlu0 %1489 }
 0x2d4   : > { %4707 = vst [vmem:[#allocation30_spill] sm:$0xff] %v3765_v10  ;;  %v3767_v29 = vpop.permute.xlu2 %1484 }
 0x2d5   : > { %v1595_v43 = vadd.f32 %v1594_v47, %v1564_v11  ;;  %4708 = vst [vmem:[#allocation31_spill] sm:$0xff] %v3767_v29  ;;  %v4611_v11 = vmax.f32 %v3755_v45, 0.0  ;;  %v3775_v47 = vadd.f32 %v3606_v40, %v3641_v21  ;;  %v1568_v56 = vmul.f32 %v3684_v63, %v4610_v54 }
 0x2d7   : > { %v1596_v36 = vadd.f32 %v1595_v43, %v1565_v44  ;;  %v3783_v44 = vadd.f32 %v3608_v4, %v3641_v21  ;;  %v1569_v0 = vmul.f32 %v3682_v8, %v4611_v11  ;;  %v4616_v40 = vmax.f32 %v3775_v47, 0.0 }
 0x2d9   : > { %v1597_v31 = vadd.f32 %v1596_v36, %v1566_v13  ;;  %v4617_v4 = vmax.f32 %v3783_v44, 0.0 }
 0x2da   : > { %v3661_v60 = vpop.permute.xlu1 %1449 }
 0x2db   : > { %v3610_v58 = vpop.f32.mrf.mxu3  ;;  %4702 = vst [vmem:[#allocation25_spill] sm:$0xff] %v3661_v60  ;;  %v1567_v49 = vmul.f32 %v3661_v60, %v4608_v46 }
 0x2dc   : > { %v3793_v36 = vadd.f32 %v3610_v58, %v3641_v21  ;;  %v1571_v58 = vmul.f32 %v3727_v61, %v4616_v40 }
 0x2dd   : > { %v1598_v46 = vadd.f32 %v1597_v31, %v1567_v49  ;;  %v3803_v49 = vpop.permute.xlu2 %1499 }
 0x2de   : > { %4710 = vst [vmem:[#allocation33_spill] sm:$0xff] %v3803_v49 }
 0x2df   : > { %v1599_v13 = vadd.f32 %v1598_v46, %v1568_v56  ;;  %v4619_v46 = vmax.f32 %v3793_v36, 0.0 }
 0x2e1   : > { %v1600_v27 = vadd.f32 %v1599_v13, %v1569_v0 }
 0x2e2   : > { %v3699_v30 = vpop.permute.xlu1 %1464 }
 0x2e3   : > { %v3612_v41 = vpop.f32.mrf.mxu3  ;;  %4705 = vst [vmem:[#allocation28_spill] sm:$0xff] %v3699_v30  ;;  %v1570_v54 = vmul.f32 %v3699_v30, %v4613_v32  ;;  %v3813_v32 = vpop.permute.xlu0 %1504 }
 0x2e4   : > { %v3801_v31 = vadd.f32 %v3612_v41, %v3641_v21  ;;  %4711 = vst [vmem:[#allocation34_spill] sm:$0xff] %v3813_v32  ;;  %v1572_v41 = vmul.f32 %v3725_v55, %v4617_v4 }
 0x2e5   : > { %v1601_v26 = vadd.f32 %v1600_v27, %v1570_v54 }
 0x2e6   : > { %v4622_v24 = vmax.f32 %v3801_v31, 0.0 }
 0x2e7   : > { %v1602_v13 = vadd.f32 %v1601_v26, %v1571_v58 }
 0x2e8   : > { %v1574_v25 = vmul.f32 %v3767_v29, %v4622_v24 }
 0x2e9   : > { %v1603_v4 = vadd.f32 %v1602_v13, %v1572_v41  ;;  %v3849_v13 = vpop.permute.xlu2 %1514 }
 0x2ea   : > { %v3739_v7 = vpop.permute.xlu1 %1479  ;;  %4713 = vst [vmem:[#allocation36_spill] sm:$0xff] %v3849_v13 }
 0x2eb   : > { %v3614_v59 = vpop.f32.mrf.mxu3  ;;  %4706 = vst [vmem:[#allocation29_spill] sm:$0xff] %v3739_v7  ;;  %v1573_v40 = vmul.f32 %v3739_v7, %v4619_v46 }
 0x2ec   : > { %v3811_v56 = vadd.f32 %v3614_v59, %v3641_v21 }
 0x2ed   : > { %v1604_v46 = vadd.f32 %v1603_v4, %v1573_v40  ;;  %v3859_v4 = vpop.permute.xlu0 %1519 }
 0x2ee   : > { %v4625_v59 = vmax.f32 %v3811_v56, 0.0  ;;  %4714 = vst [vmem:[#allocation37_spill] sm:$0xff] %v3859_v4 }
 0x2ef   : > { %v1605_v24 = vadd.f32 %v1604_v46, %v1574_v25 }
 0x2f2   : > { %v3785_v43 = vpop.permute.xlu1 %1494 }
 0x2f3   : > { %v3616_v5 = vpop.f32.mrf.mxu3  ;;  %4709 = vst [vmem:[#allocation32_spill] sm:$0xff] %v3785_v43 }
 0x2f4   : > { %v3821_v0 = vadd.f32 %v3616_v5, %v3641_v21 }
 0x2f6   : > { %v4628_v5 = vmax.f32 %v3821_v0, 0.0 }
 0x2fa   : > { %v3831_v54 = vpop.permute.xlu1 %1509 }
 0x2fb   : > { %v3622_v14 = vpop.f32.mrf.mxu3  ;;  %4712 = vst [vmem:[#allocation35_spill] sm:$0xff] %v3831_v54 }
 0x2fc   : > { %v3829_v27 = vadd.f32 %v3622_v14, %v3641_v21  ;;  %v1575_v14 = vmul.f32 %v3765_v10, %v4625_v59 }
 0x2fe   : > { %v4629_v7 = vmax.f32 %v3829_v27, 0.0  ;;  %v1606_v59 = vadd.f32 %v1605_v24, %v1575_v14 }
 0x302   : > { %v3877_v14 = vpop.permute.xlu1 %1524 }
 0x303   : > { %v3628_v17 = vpop.f32.mrf.mxu3  ;;  %4715 = vst [vmem:[#allocation38_spill] sm:$0xff] %v3877_v14 }
 0x304   : > { %v3839_v26 = vadd.f32 %v3628_v17, %v3641_v21  ;;  %v1576_v17 = vmul.f32 %v3785_v43, %v4628_v5 }
 0x306   : > { %v4632_v29 = vmax.f32 %v3839_v26, 0.0  ;;  %v1607_v46 = vadd.f32 %v1606_v59, %v1576_v17 }
 0x308   : > { %v1578_v5 = vmul.f32 %v3813_v32, %v4632_v29 }
 0x30b   : > { %v3636_v19 = vpop.f32.mrf.mxu3 }
 0x30c   : > { %v3847_v41 = vadd.f32 %v3636_v19, %v3641_v21  ;;  %v1577_v19 = vmul.f32 %v3803_v49, %v4629_v7 }
 0x30e   : > { %v4637_v10 = vmax.f32 %v3847_v41, 0.0  ;;  %v1608_v49 = vadd.f32 %v1607_v46, %v1577_v19  ;;  %v3893_v19 = vpop.permute.xlu2 %1529 }
 0x30f   : > { %4716 = vst [vmem:[#allocation39_spill] sm:$0xff] %v3893_v19 }
 0x310   : > { %v1609_v29 = vadd.f32 %v1608_v49, %v1578_v5  ;;  %v3902_v5 = vpop.permute.xlu0 %1534 }
 0x311   : > { %4717 = vst [vmem:[#allocation40_spill] sm:$0xff] %v3902_v5 }
 0x313   : > { %v3651_v9 = vpop.f32.mrf.mxu3 }
 0x314   : > { %v3857_v40 = vadd.f32 %v3651_v9, %v3641_v21 }
 0x316   : > { %v4638_v9 = vmax.f32 %v3857_v40, 0.0 }
 0x318   : > { %v1580_v32 = vmul.f32 %v3849_v13, %v4638_v9 }
 0x31b   : > { %v3686_v28 = vpop.f32.mrf.mxu3 }
 0x31c   : > { %v3867_v25 = vadd.f32 %v3686_v28, %v3641_v21  ;;  %v1579_v28 = vmul.f32 %v3831_v54, %v4637_v10 }
 0x31e   : > { %v4643_v59 = vmax.f32 %v3867_v25, 0.0  ;;  %v1610_v46 = vadd.f32 %v1609_v29, %v1579_v28 }
 0x320   : > { %v1581_v10 = vmul.f32 %v3859_v4, %v4643_v59  ;;  %v1611_v9 = vadd.f32 %v1610_v46, %v1580_v32  ;;  %v3918_v32 = vpop.permute.xlu1 %1539 }
 0x321   : > { %4720 = vst [vmem:[#allocation43_spill] sm:$0xff] %v3918_v32 }
 0x322   : > { %v1612_v54 = vadd.f32 %v1611_v9, %v1581_v10 }
 0x323   : > { %v3729_v2 = vpop.f32.mrf.mxu3 }
 0x324   : > { %v3875_v24 = vadd.f32 %v3729_v2, %v3641_v21 }
 0x326   : > { %v4646_v2 = vmax.f32 %v3875_v24, 0.0 }
 0x32b   : > { %v1318_v3 = vpop.f32.mrf.mxu3 }
 0x32c   : > { %v3884_v17 = vadd.f32 %v1318_v3, %v3641_v21 }
 0x32e   : > { %v4649_v3 = vmax.f32 %v3884_v17, 0.0 }
 0x330   : > { %v1583_v59 = vmul.f32 %v3893_v19, %v4649_v3  ;;  %v3928_v3 = vpop.permute.xlu2 %1544 }
 0x331   : > { %4721 = vst [vmem:[#allocation44_spill] sm:$0xff] %v3928_v3 }
 0x333   : > { %v1320_v11 = vpop.f32.mrf.mxu3 }
 0x334   : > { %v3891_v43 = vadd.f32 %v1320_v11, %v3641_v21  ;;  %v1582_v11 = vmul.f32 %v3877_v14, %v4646_v2 }
 0x336   : > { %v4652_v13 = vmax.f32 %v3891_v43, 0.0  ;;  %v1613_v46 = vadd.f32 %v1612_v54, %v1582_v11  ;;  %v3933_v11 = vpop.permute.xlu0 %1549 }
 0x337   : > { %4722 = vst [vmem:[#allocation45_spill] sm:$0xff] %v3933_v11 }
 0x338   : > { %v1584_v2 = vmul.f32 %v3902_v5, %v4652_v13  ;;  %v1614_v14 = vadd.f32 %v1613_v46, %v1583_v59  ;;  %v3942_v5 = vpop.permute.xlu1 %1554 }
 0x33b   : > { %v1323_v58 = vpop.f32.mrf.mxu3 }
 0x33c   : > { %v3900_v49 = vadd.f32 %v1323_v58, %v3641_v21 }
 0x33e   : > { %v4653_v58 = vmax.f32 %v3900_v49, 0.0 }
 0x340   : > { %v1585_v10 = vmul.f32 %v3918_v32, %v4653_v58 }
 0x343   : > { %v1325_v7 = vpop.f32.mrf.mxu3 }
 0x344   : > { %v3909_v29 = vadd.f32 %v1325_v7, %v3641_v21 }
 0x346   : > { %4718 = vst [vmem:[#allocation41_spill] sm:$0xff] %v3909_v29  ;;  %v4658_v7 = vmax.f32 %v3909_v29, 0.0 }
 0x348   : > { %v1586_v54 = vmul.f32 %v3928_v3, %v4658_v7 }
 0x34b   : > { %v1328_v28 = vpop.f32.mrf.mxu3 }
 0x34c   : > { %v3916_v4 = vadd.f32 %v1328_v28, %v3641_v21  ;;  %v1615_v28 = vadd.f32 %v1614_v14, %v1584_v2 }
 0x34e   : > { %4719 = vst [vmem:[#allocation42_spill] sm:$0xff] %v3916_v4  ;;  %v4663_v9 = vmax.f32 %v3916_v4, 0.0  ;;  %v1616_v13 = vadd.f32 %v1615_v28, %v1585_v10 }
 0x350   : > { %v1587_v59 = vmul.f32 %v3933_v11, %v4663_v9  ;;  %v1617_v58 = vadd.f32 %v1616_v13, %v1586_v54  ;;  %v4725_v54 = vmax.f32 %v3659_v50, 0.0 }
 0x352   : > { %v1618_v14 = vadd.f32 %v1617_v58, %v1587_v59 }
 0x353   : > { %v1330_v19 = vpop.f32.mrf.mxu3 }
 0x354   : > { %v3939_v46 = vadd.f32 %v1330_v19, %v3641_v21  ;;  %v4723_v21 = vmax.f32 %v3655_v23, 0.0  ;;  %v4724_v19 = vmax.f32 %v3645_v34, 0.0  ;;  %v4726_v23 = vmax.f32 %v3666_v48, 0.0 }
 0x355   : > { %v4727_v34 = vmax.f32 %v3672_v39, 0.0  ;;  %v4729_v39 = vmax.f32 %v3697_v20, 0.0  ;;  %v4731_v20 = vmax.f32 %v3715_v42, 0.0  ;;  %v4733_v42 = vmax.f32 %v3737_v12, 0.0 }
 0x356   : > { %v4666_v32 = vmax.f32 %v3939_v46, 0.0  ;;  %v4735_v12 = vmax.f32 %v3755_v45, 0.0  ;;  %v4737_v45 = vmax.f32 %v3775_v47, 0.0  ;;  %v4739_v47 = vmax.f32 %v3793_v36, 0.0 }
 0x357   : > { %v4741_v36 = vmax.f32 %v3811_v56, 0.0  ;;  %v4745_v56 = vmax.f32 %v3829_v27, 0.0  ;;  %v4751_v27 = vmax.f32 %v3847_v41, 0.0  ;;  %v4756_v41 = vmax.f32 %v3867_v25, 0.0 }
 0x358   : > { %v1588_v2 = vmul.f32 %v3942_v5, %v4666_v32  ;;  %v4760_v25 = vmax.f32 %v3884_v17, 0.0  ;;  %v4764_v17 = vmax.f32 %v3900_v49, 0.0 }
 0x35a   : > { %v1619_v7 = vadd.f32 %v1618_v14, %v1588_v2  ;;  %v4728_v2 = vmax.f32 %v3680_v62, 0.0 }
 0x35c   : > { %v1620_v3 = vrot.slane %v1619_v7, 4 }
 0x35e   : > { %v1621_v10 = vadd.f32 %v1620_v3, %v1619_v7 }
 0x360   : > { %v1622_v28 = vrot.slane %v1621_v10, 2 }
 0x362   : > { %v1623_v4 = vadd.f32 %v1622_v28, %v1621_v10 }
 0x364   : > { %v1624_v29 = vrot.slane %v1623_v4, 1 }
 0x366   : > { %v1625_v9 = vadd.f32 %v1624_v29, %v1623_v4 }
 0x368   : > { %v3947_v11 = vmul.f32 0.00390625, %v1625_v9 }
 0x36a   : > { %v3952_v13 = vsub.f32 %v4723_v21, %v3947_v11  ;;  %v3957_v58 = vsub.f32 %v4724_v19, %v3947_v11  ;;  %v3962_v3 = vsub.f32 %v4725_v54, %v3947_v11  ;;  %v3971_v7 = vsub.f32 %v4726_v23, %v3947_v11 }
 0x36b   : > { %v3976_v9 = vsub.f32 %v4727_v34, %v3947_v11  ;;  %v3985_v10 = vsub.f32 %v4728_v2, %v3947_v11  ;;  %v3992_v28 = vsub.f32 %v4729_v39, %v3947_v11  ;;  %v4008_v2 = vsub.f32 %v4731_v20, %v3947_v11 }
 0x36c   : > { %v1659_v4 = vmul.f32 %v3952_v13, %v3952_v13  ;;  %v1660_v29 = vmul.f32 %v3957_v58, %v3957_v58  ;;  %v1661_v50 = vmul.f32 %v3962_v3, %v3962_v3  ;;  %v1662_v48 = vmul.f32 %v3971_v7, %v3971_v7 }
 0x36d   : > { %v1663_v21 = vmul.f32 %v3976_v9, %v3976_v9 }
 0x36e   : > { %v1691_v59 = vmul.f32 %v1659_v4, %v3618_v6  ;;  %v1692_v14 = vmul.f32 %v1660_v29, %v3626_v16  ;;  %v1693_v19 = vmul.f32 %v1661_v50, %v3620_v57  ;;  %v4730_v4 = vmax.f32 %v3707_v35, 0.0 }
 0x36f   : > { %v1664_v29 = vmul.f32 %v3985_v10, %v3985_v10  ;;  %v1694_v23 = vmul.f32 %v1662_v48, %v3630_v37  ;;  %v1665_v50 = vmul.f32 %v3992_v28, %v3992_v28  ;;  %v4732_v35 = vmax.f32 %v3723_v51, 0.0 }
 0x370   : > { %v1723_v54 = vadd.f32 %v1692_v14, %v1691_v59  ;;  %v4000_v62 = vsub.f32 %v4730_v4, %v3947_v11  ;;  %v1695_v59 = vmul.f32 %v1663_v21, %v3624_v15  ;;  %v4024_v4 = vsub.f32 %v4733_v42, %v3947_v11 }
 0x371   : > { %v4016_v39 = vsub.f32 %v4732_v35, %v3947_v11  ;;  %v1667_v21 = vmul.f32 %v4008_v2, %v4008_v2  ;;  %v4734_v51 = vmax.f32 %v3747_v1, 0.0  ;;  %v4040_v35 = vsub.f32 %v4735_v12, %v3947_v11 }
 0x372   : > { %v1724_v34 = vadd.f32 %v1723_v54, %v1693_v19  ;;  %v1666_v48 = vmul.f32 %v4000_v62, %v4000_v62  ;;  %v1696_v19 = vmul.f32 %v1664_v29, %v3634_v38  ;;  %v4736_v1 = vmax.f32 %v3763_v33, 0.0 }
 0x373   : > { %v4032_v20 = vsub.f32 %v4734_v51, %v3947_v11  ;;  %v1668_v29 = vmul.f32 %v4016_v39, %v4016_v39  ;;  %v4056_v51 = vsub.f32 %v4737_v45, %v3947_v11  ;;  %v4738_v33 = vmax.f32 %v3783_v44, 0.0 }
 0x374   : > { %v1725_v14 = vadd.f32 %v1724_v34, %v1694_v23  ;;  %v1697_v23 = vmul.f32 %v1665_v50, %v3632_v18  ;;  %v1669_v50 = vmul.f32 %v4024_v4, %v4024_v4  ;;  %v4048_v42 = vsub.f32 %v4736_v1, %v3947_v11 }
 0x375   : > { %v4064_v12 = vsub.f32 %v4738_v33, %v3947_v11  ;;  %v4072_v1 = vsub.f32 %v4739_v47, %v3947_v11  ;;  %v4740_v44 = vmax.f32 %v3801_v31, 0.0  ;;  %v4088_v33 = vsub.f32 %v4741_v36, %v3947_v11 }
 0x376   : > { %v1726_v54 = vadd.f32 %v1725_v14, %v1695_v59  ;;  %v1698_v59 = vmul.f32 %v1666_v48, %v3638_v52  ;;  %v1670_v48 = vmul.f32 %v4032_v20, %v4032_v20  ;;  %v4743_v31 = vmax.f32 %v3821_v0, 0.0 }
 0x377   : > { %v4080_v45 = vsub.f32 %v4740_v44, %v3947_v11  ;;  %4742 = vst [vmem:[#allocation46_spill] sm:$0xff] %v4088_v33  ;;  %v4104_v44 = vsub.f32 %v4745_v56, %v3947_v11  ;;  %v4748_v0 = vmax.f32 %v3839_v26, 0.0  ;;  %v4120_v56 = vsub.f32 %v4751_v27, %v3947_v11 }
 0x378   : > { %v1727_v34 = vadd.f32 %v1726_v54, %v1696_v19  ;;  %v1699_v19 = vmul.f32 %v1667_v21, %v3649_v53  ;;  %v1671_v21 = vmul.f32 %v4040_v35, %v4040_v35  ;;  %v4096_v47 = vsub.f32 %v4743_v31, %v3947_v11 }
 0x379   : > { %4746 = vst [vmem:[#allocation48_spill] sm:$0xff] %v4104_v44  ;;  %v4112_v31 = vsub.f32 %v4748_v0, %v3947_v11  ;;  %v4754_v26 = vmax.f32 %v3857_v40, 0.0  ;;  %v4136_v27 = vsub.f32 %v4756_v41, %v3947_v11  ;;  %v4758_v40 = vmax.f32 %v3875_v24, 0.0 }
 0x37a   : > { %v1728_v14 = vadd.f32 %v1727_v34, %v1697_v23  ;;  %v1700_v23 = vmul.f32 %v1668_v29, %v3647_v22  ;;  %v1672_v29 = vmul.f32 %v4048_v42, %v4048_v42  ;;  %4744 = vst [vmem:[#allocation47_spill] sm:$0xff] %v4096_v47  ;;  %v4152_v41 = vsub.f32 %v4760_v25, %v3947_v11 }
 0x37b   : > { %4749 = vst [vmem:[#allocation49_spill] sm:$0xff] %v4112_v31  ;;  %v4128_v0 = vsub.f32 %v4754_v26, %v3947_v11  ;;  %v4144_v26 = vsub.f32 %v4758_v40, %v3947_v11  ;;  %v4762_v24 = vmax.f32 %v3891_v43, 0.0  ;;  %v1655_v25 = vsub.f32 %v4764_v17, %v3947_v11  ;;  %v4771_v17 = vld [vmem:[#allocation39_spill] sm:$0xff] }
 0x37c   : > { %v1729_v54 = vadd.f32 %v1728_v14, %v1698_v59  ;;  %v1701_v59 = vmul.f32 %v1669_v50, %v3661_v60  ;;  %v1673_v50 = vmul.f32 %v4056_v51, %v4056_v51  ;;  %4752 = vst [vmem:[#allocation50_spill] sm:$0xff] %v4120_v56  ;;  %v4776_v60 = vld [vmem:[#allocation45_spill] sm:$0xff] }
 0x37d   : > { %v1654_v40 = vsub.f32 %v4762_v24, %v3947_v11  ;;  %v1687_v49 = vmul.f32 %v1655_v25, %v1655_v25 }
 0x37e   : > { %v1730_v34 = vadd.f32 %v1729_v54, %v1699_v19  ;;  %v1702_v19 = vmul.f32 %v1670_v48, %v3684_v63  ;;  %v1674_v48 = vmul.f32 %v4064_v12, %v4064_v12 }
 0x380   : > { %v1731_v14 = vadd.f32 %v1730_v34, %v1700_v23  ;;  %v1703_v23 = vmul.f32 %v1671_v21, %v3682_v8  ;;  %v1675_v21 = vmul.f32 %v4072_v1, %v4072_v1 }
 0x382   : > { %v1732_v54 = vadd.f32 %v1731_v14, %v1701_v59  ;;  %v1704_v59 = vmul.f32 %v1672_v29, %v3699_v30  ;;  %v1676_v29 = vmul.f32 %v4080_v45, %v4080_v45  ;;  %v4774_v30 = vld [vmem:[#allocation43_spill] sm:$0xff] }
 0x384   : > { %v1733_v34 = vadd.f32 %v1732_v54, %v1702_v19  ;;  %v1705_v19 = vmul.f32 %v1673_v50, %v3727_v61  ;;  %v1677_v50 = vmul.f32 %v4088_v33, %v4088_v33 }
 0x386   : > { %v1734_v14 = vadd.f32 %v1733_v34, %v1703_v23  ;;  %v1706_v23 = vmul.f32 %v1674_v48, %v3725_v55  ;;  %v1678_v48 = vmul.f32 %v4096_v47, %v4096_v47 }
 0x388   : > { %v1735_v54 = vadd.f32 %v1734_v14, %v1704_v59  ;;  %v4747_v59 = vld [vmem:[#allocation29_spill] sm:$0xff] }
 0x389   : > { %v1707_v14 = vmul.f32 %v1675_v21, %v4747_v59  ;;  %v1679_v21 = vmul.f32 %v4104_v44, %v4104_v44  ;;  %v1684_v44 = vmul.f32 %v4144_v26, %v4144_v26  ;;  %v4768_v59 = vld [vmem:[#allocation38_spill] sm:$0xff] }
 0x38a   : > { %v1736_v34 = vadd.f32 %v1735_v54, %v1705_v19  ;;  %v4750_v19 = vld [vmem:[#allocation31_spill] sm:$0xff] }
 0x38b   : > { %v1708_v54 = vmul.f32 %v1676_v29, %v4750_v19  ;;  %v1680_v29 = vmul.f32 %v4112_v31, %v4112_v31  ;;  %v4765_v19 = vld [vmem:[#allocation37_spill] sm:$0xff]  ;;  %v1716_v31 = vmul.f32 %v1684_v44, %v4768_v59  ;;  %v1719_v44 = vmul.f32 %v1687_v49, %v4774_v30  ;;  %v4775_v59 = vld [vmem:[#allocation44_spill] sm:$0xff] }
 0x38c   : > { %v1737_v36 = vadd.f32 %v1736_v34, %v1706_v23  ;;  %v4753_v23 = vld [vmem:[#allocation30_spill] sm:$0xff] }
 0x38d   : > { %v1709_v34 = vmul.f32 %v1677_v50, %v4753_v23  ;;  %v1681_v50 = vmul.f32 %v4120_v56, %v4120_v56 }
 0x38e   : > { %v1738_v32 = vadd.f32 %v1737_v36, %v1707_v14  ;;  %v4755_v14 = vld [vmem:[#allocation32_spill] sm:$0xff] }
 0x38f   : > { %v1710_v36 = vmul.f32 %v1678_v48, %v4755_v14  ;;  %v1682_v48 = vmul.f32 %v4128_v0, %v4128_v0 }
 0x390   : > { %v1739_v33 = vadd.f32 %v1738_v32, %v1708_v54  ;;  %v4757_v32 = vld [vmem:[#allocation33_spill] sm:$0xff] }
 0x391   : > { %v1711_v54 = vmul.f32 %v1679_v21, %v4757_v32  ;;  %v1683_v21 = vmul.f32 %v4136_v27, %v4136_v27 }
 0x392   : > { %v1740_v47 = vadd.f32 %v1739_v33, %v1709_v34  ;;  %v4759_v33 = vld [vmem:[#allocation34_spill] sm:$0xff] }
 0x393   : > { %v1712_v34 = vmul.f32 %v1680_v29, %v4759_v33  ;;  %v4763_v29 = vld [vmem:[#allocation36_spill] sm:$0xff]  ;;  %v1685_v33 = vmul.f32 %v4152_v41, %v4152_v41 }
 0x394   : > { %v1741_v23 = vadd.f32 %v1740_v47, %v1710_v36  ;;  %v4761_v47 = vld [vmem:[#allocation35_spill] sm:$0xff] }
 0x395   : > { %v1713_v36 = vmul.f32 %v1681_v50, %v4761_v47  ;;  %v1715_v50 = vmul.f32 %v1683_v21, %v4765_v19  ;;  %v1686_v47 = vmul.f32 %v1654_v40, %v1654_v40  ;;  %v4772_v21 = vmax.f32 %v3939_v46, 0.0  ;;  %v4773_v19 = vld [vmem:[#allocation40_spill] sm:$0xff] }
 0x396   : > { %v1742_v14 = vadd.f32 %v1741_v23, %v1711_v54  ;;  %v1714_v23 = vmul.f32 %v1682_v48, %v4763_v29  ;;  %v1717_v29 = vmul.f32 %v1685_v33, %v4771_v17 }
 0x398   : > { %v1743_v32 = vadd.f32 %v1742_v14, %v1712_v34  ;;  %v4766_v34 = vld [vmem:[#allocation41_spill] sm:$0xff] }
 0x399   : > { %v4767_v43 = vmax.f32 %v4766_v34, 0.0  ;;  %v1718_v34 = vmul.f32 %v1686_v47, %v4773_v19 }
 0x39a   : > { %v1744_v54 = vadd.f32 %v1743_v32, %v1713_v36  ;;  %v4769_v32 = vld [vmem:[#allocation42_spill] sm:$0xff] }
 0x39b   : > { %v1656_v24 = vsub.f32 %v4767_v43, %v3947_v11  ;;  %v4770_v48 = vmax.f32 %v4769_v32, 0.0 }
 0x39c   : > { %v1745_v14 = vadd.f32 %v1744_v54, %v1714_v23  ;;  %v1658_v23 = vsub.f32 %v4772_v21, %v3947_v11 }
 0x39d   : > { %v1657_v36 = vsub.f32 %v4770_v48, %v3947_v11  ;;  %v1688_v54 = vmul.f32 %v1656_v24, %v1656_v24 }
 0x39e   : > { %v1746_v56 = vadd.f32 %v1745_v14, %v1715_v50  ;;  %v1690_v14 = vmul.f32 %v1658_v23, %v1658_v23 }
 0x39f   : > { %v1689_v63 = vmul.f32 %v1657_v36, %v1657_v36  ;;  %v1720_v32 = vmul.f32 %v1688_v54, %v4775_v59 }
 0x3a0   : > { %v1747_v8 = vadd.f32 %v1746_v56, %v1716_v31  ;;  %v1722_v31 = vmul.f32 %v1690_v14, %v3942_v5 }
 0x3a1   : > { %v1721_v22 = vmul.f32 %v1689_v63, %v4776_v60 }
 0x3a2   : > { %v1748_v43 = vadd.f32 %v1747_v8, %v1717_v29 }
 0x3a4   : > { %v1749_v50 = vadd.f32 %v1748_v43, %v1718_v34 }
 0x3a6   : > { %v1750_v48 = vadd.f32 %v1749_v50, %v1719_v44 }
 0x3a8   : > { %v1751_v33 = vadd.f32 %v1750_v48, %v1720_v32 }
 0x3aa   : > { %v1752_v56 = vadd.f32 %v1751_v33, %v1721_v22 }
 0x3ac   : > { %v1753_v46 = vadd.f32 %v1752_v56, %v1722_v31 }
 0x3ae   : > { %v1754_v11 = vrot.slane %v1753_v46, 4 }
 0x3b0   : > { %v1755_v21 = vadd.f32 %v1754_v11, %v1753_v46 }
 0x3b2   : > { %v1756_v17 = vrot.slane %v1755_v21, 2 }
 0x3b4   : > { %v1757_v47 = vadd.f32 %v1756_v17, %v1755_v21  ;;  %v2573_v17 = vld [vmem:[%s3065_s26] sm:$0xff]  ;;  %s2424_s26 = sshll.u32 %s2908_s9, 3 }
 0x3b5   : > { %v4189_v48 = vperm.slane %v2573_v17, 3  ;;  %v4200_v46 = vperm.slane %v2573_v17, 4  ;;  %s2025_s4 = scalar_lea.hbm %s4798_s19, %s2424_s26 }
 0x3b6   : > { %v1758_v8 = vrot.slane %v1757_v47, 1  ;;  %s2028_s8 = sshll.u32 %s2025_s4, 4  ;;  %s2029_s8 = int_to_ptr.hbm [resolvable:$true] %s2028_s8 }
 0x3b7   : > { %s2738_s7 = sshra.s32 %s2029_s8, 4  ;;  %s2739_s7 = int_to_ptr.hbm [resolvable:$true] %s2738_s7 }
 0x3b8   : > { %v1759_v29 = vadd.f32 %v1758_v8, %v1757_v47  ;;  %s2740_s16 = scalar_lea.hbm %s2739_s7, 256  ;;  %p2745_p11 = scmp.lt.s32.totalorder %s2739_s7, %s4798_s19 }
 0x3b9   : > { %p2741_p4 = scmp.ne.s32.totalorder %s2739_s7, %s2740_s16  ;;  %p2746_p13 = scmp.lt.s32.totalorder %s2744_s21, %s2740_s16 }
 0x3ba   : > { %v1760_v49 = vmul.f32 0.00390625, %v1759_v29 }
 0x3bb   : > { %p2742_p2 = pnand %p2741_p4, %p2960_p7  ;;  %p2747_p0 = por %p2746_p13, %p2745_p11 }
 0x3bc   : > { %v1761_v34 = vadd.f32 1e-05, %v1760_v49 }
 0x3bd   : > { %p2743_p10 = pneg %p2742_p2 }
 0x3be   : > { %2571 = vrsqrt.f32 %v1761_v34  ;;  %vm1768_vm1 = vweird.f32 %v1761_v34 }
 0x3bf   : > { %p2748_p3 = pnand %p2747_p0, %p2743_p10 }
 0x3c4   : > { %v2572_v43 = vpop.eup %2571 }
 0x3c5   : > { %v1763_v54 = vmul.f32 %v2572_v43, %v1761_v34  ;;  %vm1769_vm0 = vweird.f32 %v2572_v43 }
 0x3c6   : > { %vm1770_vm2 = vmor %vm1768_vm1, %vm1769_vm0 }
 0x3c7   : > { %v1764_v44 = vmul.f32 %v2572_v43, %v1763_v54 }
 0x3c9   : > { %v1765_v50 = vmul.f32 0.5, %v1764_v44 }
 0x3cb   : > { %v1766_v63 = vsub.f32 1.5, %v1765_v50 }
 0x3cd   : > { %v1767_v32 = vmul.f32 %v2572_v43, %v1766_v63 }
 0x3cf   : > { %v4185_v22 = vsel %vm1770_vm2, %v2572_v43, %v1767_v32 }
 0x3d0   : > { %v1803_v14 = vmul.f32 %v4185_v22, %v1658_v23  ;;  %v4192_v33 = vmul.f32 %v4185_v22, %v1654_v40  ;;  %v4195_v31 = vmul.f32 %v4185_v22, %v1655_v25  ;;  %v4198_v56 = vmul.f32 %v4185_v22, %v1656_v24 }
 0x3d1   : > { %v1772_v11 = vmul.f32 %v4185_v22, %v3952_v13  ;;  %v1773_v23 = vmul.f32 %v4185_v22, %v3957_v58  ;;  %v1802_v21 = vmul.f32 %v4185_v22, %v1657_v36  ;;  %v1774_v40 = vmul.f32 %v4185_v22, %v3962_v3 }
 0x3d2   : > { %v1775_v25 = vmul.f32 %v4185_v22, %v3971_v7  ;;  %v1776_v24 = vmul.f32 %v4185_v22, %v3976_v9  ;;  %v1777_v47 = vmul.f32 %v4185_v22, %v3985_v10  ;;  %v4216_v8 = vmul.f32 %v4189_v48, %v1803_v14 }
 0x3d3   : > { %v1778_v13 = vmul.f32 %v4185_v22, %v3992_v28  ;;  %v1779_v58 = vmul.f32 %v4185_v22, %v4000_v62  ;;  %v1780_v3 = vmul.f32 %v4185_v22, %v4008_v2  ;;  %v1781_v7 = vmul.f32 %v4185_v22, %v4016_v39 }
 0x3d4   : > { %v1782_v9 = vmul.f32 %v4185_v22, %v4024_v4  ;;  %v1783_v10 = vmul.f32 %v4185_v22, %v4032_v20  ;;  %v1784_v36 = vmul.f32 %v4185_v22, %v4040_v35  ;;  %v1785_v28 = vmul.f32 %v4185_v22, %v4048_v42 }
 0x3d5   : > { %v1787_v62 = vmul.f32 %v4185_v22, %v4064_v12  ;;  %v1805_v2 = vmul.f32 %v4189_v48, %v1772_v11  ;;  %v1806_v29 = vmul.f32 %v4189_v48, %v1773_v23  ;;  %v1786_v39 = vmul.f32 %v4185_v22, %v4056_v51 }
 0x3d6   : > { %v1788_v4 = vmul.f32 %v4185_v22, %v4072_v1  ;;  %v1807_v20 = vmul.f32 %v4189_v48, %v1774_v40  ;;  %v1808_v35 = vmul.f32 %v4189_v48, %v1775_v25  ;;  %v1789_v42 = vmul.f32 %v4185_v22, %v4080_v45 }
 0x3d7   : > { %v4248_v12 = vmul.f32 %v4185_v22, %v4128_v0  ;;  %v4252_v49 = vmul.f32 %v4185_v22, %v4136_v27  ;;  %v1809_v51 = vmul.f32 %v4189_v48, %v1776_v24  ;;  %v4257_v1 = vmul.f32 %v4185_v22, %v4144_v26 }
 0x3d8   : > { %v1798_v34 = vmul.f32 %v4185_v22, %v4152_v41  ;;  %v1810_v43 = vmul.f32 %v4189_v48, %v1777_v47  ;;  %v1811_v45 = vmul.f32 %v4189_v48, %v1778_v13  ;;  %v1812_v0 = vmul.f32 %v4189_v48, %v1779_v58 }
 0x3d9   : > { %v1820_v54 = vmul.f32 %v4189_v48, %v1787_v62  ;;  %v1838_v27 = vadd.f32 %v4200_v46, %v1805_v2  ;;  %v1839_v44 = vadd.f32 %v4200_v46, %v1806_v29  ;;  %v1813_v50 = vmul.f32 %v4189_v48, %v1780_v3 }
 0x3da   : > { %v1814_v26 = vmul.f32 %v4189_v48, %v1781_v7  ;;  %v1840_v63 = vadd.f32 %v4200_v46, %v1807_v20  ;;  %v1841_v41 = vadd.f32 %v4200_v46, %v1808_v35  ;;  %v1815_v32 = vmul.f32 %v4189_v48, %v1782_v9 }
 0x3db   : > { %v1816_v14 = vmul.f32 %v4189_v48, %v1783_v10  ;;  %v1819_v17 = vmul.f32 %v4189_v48, %v1786_v39  ;;  %v1842_v11 = vadd.f32 %v4200_v46, %v1809_v51  ;;  %v1817_v23 = vmul.f32 %v4189_v48, %v1784_v36 }
 0x3dc   : > { %v1818_v40 = vmul.f32 %v4189_v48, %v1785_v28  ;;  %v1821_v25 = vmul.f32 %v4189_v48, %v1788_v4  ;;  %v1843_v24 = vadd.f32 %v4200_v46, %v1810_v43  ;;  %v1844_v47 = vadd.f32 %v4200_v46, %v1811_v45  ;;  %v4778_v43 = vld [vmem:[#allocation25_spill] sm:$0xff] }
 0x3dd   : > { %v1853_v13 = vadd.f32 %v4200_v46, %v1820_v54  ;;  %v4282_v58 = vmul.f32 %v1838_v27, %v3618_v6  ;;  %v4285_v3 = vmul.f32 %v1839_v44, %v3626_v16  ;;  %v1835_v7 = vmul.f32 %v4189_v48, %v1802_v21 }
 0x3de   : > { %v1845_v9 = vadd.f32 %v4200_v46, %v1812_v0  ;;  %v4290_v10 = vmul.f32 %v1840_v63, %v3620_v57  ;;  %v4293_v36 = vmul.f32 %v1841_v41, %v3630_v37  ;;  %v1822_v28 = vmul.f32 %v4189_v48, %v1789_v42  ;;  %v4777_v42 = vld [vmem:[#allocation24_spill] sm:$0xff] }
 0x3df   : > { %v1846_v62 = vadd.f32 %v4200_v46, %v1813_v50  ;;  %v1852_v6 = vadd.f32 %v4200_v46, %v1819_v17  ;;  %v4299_v2 = vmul.f32 %v1842_v11, %v3624_v15  ;;  %1902 = vst [vmem:[#allocation2 + $0xb0] sm:$0xff] %v4282_v58  ;;  %v1833_v16 = vmul.f32 %v4189_v48, %v4195_v31  ;;  %v4779_v0 = vld [vmem:[#allocation28_spill] sm:$0xff] }
 0x3e0   : > { %v1834_v57 = vmul.f32 %v4189_v48, %v4198_v56  ;;  %v1847_v37 = vadd.f32 %v4200_v46, %v1814_v26  ;;  %v4308_v21 = vmul.f32 %v1843_v24, %v3634_v38  ;;  %1903 = vst [vmem:[#allocation2] sm:$0xff] %v4285_v3  ;;  %v1848_v29 = vadd.f32 %v4200_v46, %v1815_v32  ;;  %v4781_v26 = vld [vmem:[#allocation26_spill] sm:$0xff]  ;;  %v4784_v24 = vld [vmem:[#allocation29_spill] sm:$0xff] }
 0x3e1   : > { %v1851_v15 = vadd.f32 %v4200_v46, %v1818_v40  ;;  %v4314_v39 = vmul.f32 %v1844_v47, %v3632_v18  ;;  %v4317_v4 = vmul.f32 %v1853_v13, %v3725_v55  ;;  %1904 = vst [vmem:[#allocation2 + $0xd8] sm:$0xff] %v4290_v10  ;;  %v1849_v31 = vadd.f32 %v4200_v46, %v1816_v14  ;;  %v4782_v32 = vld [vmem:[#allocation50_spill] sm:$0xff] }
 0x3e2   : > { %v4322_v56 = vmul.f32 %v1845_v9, %v3638_v52  ;;  %1905 = vst [vmem:[#allocation2 + $0x18] sm:$0xff] %v4293_v36  ;;  %v1869_v38 = vadd.f32 %v4200_v46, %v4216_v8  ;;  %v1868_v20 = vadd.f32 %v4200_v46, %v1835_v7  ;;  %v1850_v18 = vadd.f32 %v4200_v46, %v1817_v23  ;;  %v4783_v23 = vld [vmem:[#allocation49_spill] sm:$0xff] }
 0x3e3   : > { %v4330_v35 = vmul.f32 %v1846_v62, %v3649_v53  ;;  %v4333_v55 = vmul.f32 %v1852_v6, %v3727_v61  ;;  %1906 = vst [vmem:[#allocation2 + $0x50] sm:$0xff] %v4299_v2  ;;  %1968 = vmatpush.msrb.mxu0 %v4317_v4  ;;  %v1832_v52 = vmul.f32 %v4189_v48, %v4192_v33  ;;  %v4780_v33 = vld [vmem:[#allocation27_spill] sm:$0xff] }
 0x3e4   : > { %v4340_v51 = vmul.f32 %v1847_v37, %v4777_v42  ;;  %1907 = vst [vmem:[#allocation2 + $0x68] sm:$0xff] %v4308_v21  ;;  %v4344_v8 = vmul.f32 %v1869_v38, %v3942_v5  ;;  %v1867_v53 = vadd.f32 %v4200_v46, %v1834_v57  ;;  %v1831_v61 = vmul.f32 %v4189_v48, %v1798_v34  ;;  %v4787_v62 = vld [vmem:[#allocation39_spill] sm:$0xff]  ;;  %v4790_v38 = vld [vmem:[#allocation46_spill] sm:$0xff] }
 0x3e5   : > { %v4349_v45 = vmul.f32 %v1848_v29, %v4778_v43  ;;  %v4352_v54 = vmul.f32 %v1851_v15, %v4779_v0  ;;  %1908 = vst [vmem:[#allocation2 + $0x30] sm:$0xff] %v4314_v39  ;;  %1969 = vmatpush.msrb.mxu0 %v4333_v55  ;;  %v4357_v27 = vmul.f32 %v1849_v31, %v4780_v33  ;;  %v4789_v29 = vld [vmem:[#allocation38_spill] sm:$0xff] }
 0x3e6   : > { %1909 = vst [vmem:[#allocation2 + $0x48] sm:$0xff] %v4322_v56  ;;  %1988 = vmatpush.msrb.mxu1 %v4344_v8  ;;  %v4362_v5 = vmul.f32 %v1868_v20, %v4776_v60  ;;  %v1866_v34 = vadd.f32 %v4200_v46, %v1833_v16  ;;  %v1830_v44 = vmul.f32 %v4189_v48, %v4257_v1  ;;  %v4788_v16 = vld [vmem:[#allocation47_spill] sm:$0xff] }
 0x3e7   : > { %v1854_v50 = vadd.f32 %v4200_v46, %v1821_v25  ;;  %v4369_v63 = vmul.f32 %v1850_v18, %v4781_v26  ;;  %1910 = vst [vmem:[#allocation2 + $0x80] sm:$0xff] %v4330_v35  ;;  %1970 = vmatpush.msrb.mxu0 %v4352_v54  ;;  %v1855_v41 = vadd.f32 %v4200_v46, %v1822_v28  ;;  %v4794_v26 = vld [vmem:[#allocation34_spill] sm:$0xff] }
 0x3e8   : > { %1911 = vst [vmem:[#allocation2 + $0x88] sm:$0xff] %v4340_v51  ;;  %1989 = vmatpush.msrb.mxu1 %v4362_v5  ;;  %v4377_v60 = vmul.f32 %v1867_v53, %v4775_v59  ;;  %v1865_v1 = vadd.f32 %v4200_v46, %v1832_v52  ;;  %v1794_v14 = vmul.f32 %v4185_v22, %v4782_v32  ;;  %v4791_v52 = vld [vmem:[#allocation37_spill] sm:$0xff] }
 0x3e9   : > { %1912 = vst [vmem:[#allocation2 + $0xe8] sm:$0xff] %v4349_v45  ;;  %1971 = vmatpush.msrb.mxu0 %v4369_v63  ;;  %v1829_v17 = vmul.f32 %v4189_v48, %v4252_v49  ;;  %v4389_v11 = vmul.f32 %v1866_v34, %v4774_v30  ;;  %v1864_v59 = vadd.f32 %v4200_v46, %v1831_v61  ;;  %v4785_v49 = vld [vmem:[#allocation31_spill] sm:$0xff]  ;;  %v4792_v61 = vld [vmem:[#allocation36_spill] sm:$0xff] }
 0x3ea   : > { %1913 = vst [vmem:[#allocation2 + $0xb8] sm:$0xff] %v4357_v27  ;;  %1990 = vmatpush.msrb.mxu1 %v4377_v60  ;;  %v1793_v40 = vmul.f32 %v4185_v22, %v4783_v23  ;;  %v1828_v25 = vmul.f32 %v4189_v48, %v4248_v12  ;;  %v4397_v47 = vmul.f32 %v1854_v50, %v4784_v24  ;;  %v4786_v12 = vld [vmem:[#allocation48_spill] sm:$0xff]  ;;  %v4793_v34 = vld [vmem:[#allocation35_spill] sm:$0xff] }
 0x3eb   : > { %1914 = vst [vmem:[#allocation2 + $0x60] sm:$0xff] %v4369_v63  ;;  %1972 = vmatpush.msrb.mxu0 %v4357_v27  ;;  %v4402_v13 = vmul.f32 %v1855_v41, %v4785_v49  ;;  %v4407_v30 = vmul.f32 %v1865_v1, %v4773_v19  ;;  %v1863_v7 = vadd.f32 %v4200_v46, %v1830_v44 }
 0x3ec   : > { %1915 = vst [vmem:[#allocation2 + $0xf0] sm:$0xff] %v4352_v54  ;;  %1991 = vmatpush.msrb.mxu1 %v4389_v11  ;;  %v1792_v9 = vmul.f32 %v4185_v22, %v4786_v12  ;;  %v1827_v28 = vmul.f32 %v4189_v48, %v1794_v14  ;;  %v4418_v19 = vmul.f32 %v1864_v59, %v4787_v62 }
 0x3ed   : > { %1916 = vst [vmem:[#allocation2 + $0x8] sm:$0xff] %v4333_v55  ;;  %1973 = vmatpush.msrb.mxu0 %v4349_v45  ;;  %v1862_v6 = vadd.f32 %v4200_v46, %v1829_v17  ;;  %v1791_v57 = vmul.f32 %v4185_v22, %v4788_v16  ;;  %v1826_v37 = vmul.f32 %v4189_v48, %v1793_v40 }
 0x3ee   : > { %1917 = vst [vmem:[#allocation2 + $0x78] sm:$0xff] %v4317_v4  ;;  %1992 = vmatpush.msrb.mxu1 %v4407_v30  ;;  %v4429_v15 = vmul.f32 %v1863_v7, %v4789_v29  ;;  %v1861_v31 = vadd.f32 %v4200_v46, %v1828_v25  ;;  %v1790_v20 = vmul.f32 %v4185_v22, %v4790_v38 }
 0x3ef   : > { %1918 = vst [vmem:[#allocation2 + $0x38] sm:$0xff] %v4397_v47  ;;  %1974 = vmatpush.msrb.mxu0 %v4340_v51  ;;  %v1825_v18 = vmul.f32 %v4189_v48, %v1792_v9  ;;  %v4442_v42 = vmul.f32 %v1862_v6, %v4791_v52  ;;  %v1860_v53 = vadd.f32 %v4200_v46, %v1827_v28 }
 0x3f0   : > { %1919 = vst [vmem:[#allocation2 + $0x58] sm:$0xff] %v4402_v13  ;;  %1993 = vmatpush.msrb.mxu1 %v4418_v19  ;;  %v1824_v22 = vmul.f32 %v4189_v48, %v1791_v57  ;;  %v1893_v43 = vmul.f32 %v1861_v31, %v4792_v61  ;;  %v1859_v0 = vadd.f32 %v4200_v46, %v1826_v37 }
 0x3f1   : > { %1934 = vst [vmem:[%s3067_s22] sm:$0xff] %v4282_v58  ;;  %1975 = vmatpush.msrb.mxu0 %v4330_v35  ;;  %v1823_v33 = vmul.f32 %v4189_v48, %v1790_v20  ;;  %v1892_v44 = vmul.f32 %v1860_v53, %v4793_v34  ;;  %v1858_v50 = vadd.f32 %v4200_v46, %v1825_v18 }
 0x3f2   : > { %1935 = vst [vmem:[%s3067_s22 + $0x8] sm:$0xff] %v4285_v3  ;;  %1994 = vmatpush.msrb.mxu1 %v4429_v15  ;;  %v1891_v48 = vmul.f32 %v1859_v0, %v4794_v26  ;;  %v1857_v41 = vadd.f32 %v4200_v46, %v1824_v22 }
 0x3f3   : > { %1936 = vst [vmem:[%s3067_s22 + $0x10] sm:$0xff] %v4290_v10  ;;  %1976 = vmatpush.msrb.mxu0 %v4322_v56  ;;  %v1856_v1 = vadd.f32 %v4200_v46, %v1823_v33  ;;  %v4797_v46 = vld [vmem:[#allocation30_spill] sm:$0xff] }
 0x3f4   : > { %1937 = vst [vmem:[%s3067_s22 + $0x18] sm:$0xff] %v4293_v36  ;;  %1995 = vmatpush.msrb.mxu1 %v4442_v42 }
 0x3f5   : > { %1938 = vst [vmem:[%s3067_s22 + $0x20] sm:$0xff] %v4299_v2  ;;  %1977 = vmatpush.msrb.mxu0 %v4314_v39 }
 0x3f6   : > { %1939 = vst [vmem:[%s3067_s22 + $0x28] sm:$0xff] %v4308_v21  ;;  %1996 = vmatpush.msrb.mxu1 %v1893_v43 }
 0x3f7   : > { %1940 = vst [vmem:[%s3067_s22 + $0x30] sm:$0xff] %v4314_v39  ;;  %1978 = vmatpush.msrb.mxu0 %v4308_v21  ;;  %v4795_v39 = vld [vmem:[#allocation33_spill] sm:$0xff] }
 0x3f8   : > { %1941 = vst [vmem:[%s3067_s22 + $0x38] sm:$0xff] %v4322_v56  ;;  %1997 = vmatpush.msrb.mxu1 %v1892_v44  ;;  %v1890_v21 = vmul.f32 %v1858_v50, %v4795_v39  ;;  %v4796_v56 = vld [vmem:[#allocation32_spill] sm:$0xff] }
 0x3f9   : > { %1942 = vst [vmem:[%s3067_s22 + $0x40] sm:$0xff] %v4330_v35  ;;  %1979 = vmatpush.msrb.mxu0 %v4299_v2  ;;  %v1889_v35 = vmul.f32 %v1857_v41, %v4796_v56  ;;  %v1888_v2 = vmul.f32 %v1856_v1, %v4797_v46 }
 0x3fa   : > { %1943 = vst [vmem:[%s3067_s22 + $0x48] sm:$0xff] %v4340_v51  ;;  %1998 = vmatpush.msrb.mxu1 %v1891_v48 }
 0x3fb   : > { %1944 = vst [vmem:[%s3067_s22 + $0x50] sm:$0xff] %v4349_v45  ;;  %1980 = vmatpush.msrb.mxu0 %v4293_v36  ;;  %v1966_v36 = vld [vmem:[#allocation6] sm:$0xff] }
 0x3fc   : > { %1945 = vst [vmem:[%s3067_s22 + $0x58] sm:$0xff] %v4357_v27  ;;  %1999 = vmatpush.msrb.mxu1 %v1890_v21 }
 0x3fd   : > { %1946 = vst [vmem:[%s3067_s22 + $0x60] sm:$0xff] %v4369_v63  ;;  %1981 = vmatpush.msrb.mxu0 %v4290_v10  ;;  %v1967_v10 = vld [vmem:[#allocation6 + $0x8] sm:$0xff] }
 0x3fe   : > { %1947 = vst [vmem:[%s3067_s22 + $0x68] sm:$0xff] %v4352_v54  ;;  %2000 = vmatpush.msrb.mxu1 %v1889_v35 }
 0x3ff   : > { %1948 = vst [vmem:[%s3067_s22 + $0x70] sm:$0xff] %v4333_v55  ;;  %1982 = vmatpush.msrb.mxu0 %v4285_v3 }
 0x400   : > { %1949 = vst [vmem:[%s3067_s22 + $0x78] sm:$0xff] %v4317_v4  ;;  %2001 = vmatpush.msrb.mxu1 %v1888_v2 }
 0x401   : > { %1950 = vst [vmem:[%s3067_s22 + $0x80] sm:$0xff] %v4397_v47  ;;  %1983 = vmatpush.msrb.mxu0 %v4282_v58 }
 0x402   : > { %1951 = vst [vmem:[%s3067_s22 + $0x88] sm:$0xff] %v4402_v13  ;;  %2002 = vmatpush.msrb.mxu1 %v4402_v13  ;;  %1984 = vmatmul.f32.vlgmr.msrb.gmra.mxu0 %v1966_v36 }
 0x403   : > { %1933 = vst [vmem:[#allocation2 + $0x98] sm:$0xff] %v4344_v8 }
 0x404   : > { %1965 = vst [vmem:[%s3067_s22 + $0xf8] sm:$0xff] %v4344_v8  ;;  %2003 = vmatpush.msrb.mxu1 %v4397_v47 }
 0x405   : > { %1932 = vst [vmem:[#allocation2 + $0x20] sm:$0xff] %v4362_v5  ;;  %2004 = vmatmul.f32.vlgmr.msrb.gmra.mxu1 %v1967_v10 }
 0x406   : > { %1964 = vst [vmem:[%s3067_s22 + $0xf0] sm:$0xff] %v4362_v5 }
 0x407   : > { %1931 = vst [vmem:[#allocation2 + $0xf8] sm:$0xff] %v4377_v60 }
 0x408   : > { %1963 = vst [vmem:[%s3067_s22 + $0xe8] sm:$0xff] %v4377_v60 }
 0x409   : > { %1930 = vst [vmem:[#allocation2 + $0xa0] sm:$0xff] %v4389_v11 }
 0x40a   : > { %1962 = vst [vmem:[%s3067_s22 + $0xe0] sm:$0xff] %v4389_v11 }
 0x40b   : > { %1929 = vst [vmem:[#allocation2 + $0x28] sm:$0xff] %v4407_v30 }
 0x40c   : > { %1961 = vst [vmem:[%s3067_s22 + $0xd8] sm:$0xff] %v4407_v30 }
 0x40d   : > { %1928 = vst [vmem:[#allocation2 + $0x10] sm:$0xff] %v4418_v19 }
 0x40e   : > { %1960 = vst [vmem:[%s3067_s22 + $0xd0] sm:$0xff] %v4418_v19 }
 0x40f   : > { %1927 = vst [vmem:[#allocation2 + $0xd0] sm:$0xff] %v4429_v15 }
 0x410   : > { %1959 = vst [vmem:[%s3067_s22 + $0xc8] sm:$0xff] %v4429_v15 }
 0x411   : > { %1926 = vst [vmem:[#allocation2 + $0xa8] sm:$0xff] %v4442_v42 }
 0x412   : > { %1958 = vst [vmem:[%s3067_s22 + $0xc0] sm:$0xff] %v4442_v42 }
 0x413   : > { %1925 = vst [vmem:[#allocation2 + $0xc0] sm:$0xff] %v1893_v43 }
 0x414   : > { %1957 = vst [vmem:[%s3067_s22 + $0xb8] sm:$0xff] %v1893_v43 }
 0x415   : > { %1924 = vst [vmem:[#allocation2 + $0x70] sm:$0xff] %v1892_v44 }
 0x416   : > { %1956 = vst [vmem:[%s3067_s22 + $0xb0] sm:$0xff] %v1892_v44 }
 0x417   : > { %1923 = vst [vmem:[#allocation2 + $0x90] sm:$0xff] %v1891_v48 }
 0x418   : > { %1955 = vst [vmem:[%s3067_s22 + $0xa8] sm:$0xff] %v1891_v48 }
 0x419   : > { %1922 = vst [vmem:[#allocation2 + $0xe0] sm:$0xff] %v1890_v21 }
 0x41a   : > { %1954 = vst [vmem:[%s3067_s22 + $0xa0] sm:$0xff] %v1890_v21 }
 0x41b   : > { %1921 = vst [vmem:[#allocation2 + $0xc8] sm:$0xff] %v1889_v35 }
 0x41c   : > { %1953 = vst [vmem:[%s3067_s22 + $0x98] sm:$0xff] %v1889_v35 }
 0x41d   : > { %1920 = vst [vmem:[#allocation2 + $0x40] sm:$0xff] %v1888_v2 }
 0x41e   : > { %1952 = vst [vmem:[%s3067_s22 + $0x90] sm:$0xff] %v1888_v2 }
 0x41f   : > { %2751 = shalt.err (!%p2748_p3)
}
 0x420   : > { %s2839_s22 = smov 128   ;;  %s2840_s24 = smov 384  }
 0x421   : > { %s2841_s27 = smov 8   ;;  %s4800_s10 = sld [smem:[#allocation54_spill]] }
 0x422   : > { %2492 = dma.vmem_to_hbm [thread:$0]  (%p2960_p7), %s2027_s25, 4096, %s2029_s8, %s2010_s1, %s2839_s22, %s2840_s24, %s2841_s27  }
 0x423   : > { %s2043_s7 = sshll.u32 %s3069_s23, 4  ;;  %s2015_s17 = scalar_lea.sflag [#allocation13], %s3052_s13  ;;  %s2044_s7 = int_to_ptr.vmem [resolvable:$true] %s2043_s7 }
 0x427   : > { %s2041_s4 = scalar_lea.hbm %s4800_s10, %s2424_s26  ;;  %s2772_s26 = scalar_lea.hbm %s4800_s10, 24 }
 0x428   : > { %s2045_s16 = sshll.u32 %s2041_s4, 4  ;;  %s2046_s16 = int_to_ptr.hbm [resolvable:$true] %s2045_s16 }
 0x429   : > { %s2766_s15 = sshra.s32 %s2046_s16, 4  ;;  %s2767_s15 = int_to_ptr.hbm [resolvable:$true] %s2766_s15 }
 0x42a   : > { %s2768_s21 = scalar_lea.hbm %s2767_s15, 8  ;;  %p2773_p8 = scmp.lt.s32.totalorder %s2767_s15, %s4800_s10 }
 0x42b   : > { %p2769_p12 = scmp.ne.s32.totalorder %s2767_s15, %s2768_s21  ;;  %p2774_p9 = scmp.lt.s32.totalorder %s2772_s26, %s2768_s21 }
 0x42d   : > { %p2770_p5 = pnand %p2769_p12, %p2960_p7  ;;  %p2775_p4 = por %p2774_p9, %p2773_p8 }
 0x42f   : > { %p2771_p1 = pneg %p2770_p5 }
 0x431   : > { %p2776_p2 = pnand %p2775_p4, %p2771_p1 }
 0x47f   : > { %v1985_v58 = vpop.f32.mrf.mxu0 }
 0x482   : > { %v2005_v3 = vpop.f32.mrf.mxu1 }
 0x483   : > { %v2006_v4 = vadd.f32 %v2005_v3, %v1985_v58 }
 0x485   : > { %2008 = vst [vmem:[%s3069_s23] sm:$0xff] %v2006_v4 }
 0x486   : > { %2779 = shalt.err (!%p2776_p2)
}
 0x487   : > { %2493 = dma.vmem_to_hbm [thread:$0]  (%p2960_p7), %s2044_s7, 128, %s2046_s16, %s2015_s17  }
 0x488 PF: > { %s4801_s13 = sld [smem:[#allocation19_spill]]  ;;  %p2525_p10 = scmp.ge.s32.totalorder %s2830_s30, 2 }
 0x48a   : > { %p2514_p11 = pnand %p2525_p10, %p2922_p6 }
 0x48c   : > { %p2515_p13 = pneg %p2514_p11 }
 0x48e   : > { %s2057_s18 = sand.u32 1, %s4801_s13  }
 0x48f   : > { %s2058_s11 = scalar_lea.sflag [#allocation5], %s2057_s18 }
 0x490   : > { %2809 = dma.done.wait (%p2515_p13), %s2058_s11, 4096  }
 0x491   : > { %2811 = vsyncadd (%p2515_p13), %s2058_s11, 4294963200  ;;  %s2068_s22 = scalar_lea.sflag [#allocation13], %s2057_s18 }
 0x492   : > { %2813 = dma.done.wait (%p2515_p13), %s2068_s22, 128  }
 0x493   : > { %2815 = vsyncadd (%p2515_p13), %s2068_s22, 4294967168  ;;  %s4803_s30 = sld [smem:[#allocation21_spill]]  ;;  %s4805_s27 = smov %s2822_s28 }
 0x494   : > { %s4804_s20 = sld [smem:[#allocation22_spill]]  ;;  %s4806_s28 = smov %s2826_s29 }
 0x499   : > { %p24_p7 = scmp.ge.s32.totalorder %s4803_s30, 5  }
 0x49a   : > { %s4807_s29 = smov %s4804_s20 }
 0x49b   :  { %26 = sbr.rel (!%p24_p7) target bundleno = 12 (0xc), region = 143 }
 0x4a0   :  { %2074 = vsyncpa [#allocation4], 1 }
 0x4a1   :  { %2076 = vsyncpa [#allocation4 + $0x1], 1 }
 0x4a2   :  { %2077 = vsyncpa [#allocation7], 1 }
 0x4a3   :  { %2078 = vsyncpa [#allocation5], 1 }
 0x4a4   :  { %2080 = vsyncpa [#allocation5 + $0x1], 1 }
 0x4a5   :  { %2081 = vsyncpa [#allocation13], 1 }
 0x4a6   :  { %2083 = vsyncpa [#allocation13 + $0x1], 1 }

</bundles_post_ra>
